<compile_context>
chip_gen: v6e
topology: v6e:2x2x1
jax: 0.10.0
libtpu: 0.0.40
codegen_flags: <defaults>
</compile_context>

<pallas_src>
import jax
import jax.numpy as jnp
from jax.experimental import pallas as pl
from jax.experimental.pallas import tpu as pltpu


def _linfuse_kernel(x_ref, wc_ref, bc_ref, w2_ref, b2_ref, out_ref):
    x = x_ref[...]                                                    # (tp, P*D_in)

    # layer 0 (fuse linear already folded in): ReLU(x @ Wc_blk + bc_blk), f32 epilogue
    h = jnp.dot(x, wc_ref[...], preferred_element_type=jnp.float32) + bc_ref[...]
    h = jnp.maximum(h, 0.0)

    # layer 1: h @ W2_blk + b2_blk (cast h to MXU dtype only; accumulate in f32)
    out = (jnp.dot(h.astype(w2_ref.dtype), w2_ref[...],
                   preferred_element_type=jnp.float32)
           + b2_ref[...])
    out_ref[...] = out.astype(out_ref.dtype)                          # (tp, P*O) lane-dense


def _block_diag(w, p):
    """(k, n) -> (p*k, p*n) block-diagonal with p copies of w on the diagonal."""
    if p == 1:
        return w
    k, n = w.shape
    eye = jnp.eye(p, dtype=w.dtype)
    blk = eye[:, :, None, None] * w[None, None, :, :]                 # (p, p, k, n)
    return blk.transpose(0, 2, 1, 3).reshape(p * k, p * n)


def lin_fuse_forward(data, fused_params, *, tb=16384, compute_dtype=jnp.bfloat16,
                     pack=None, vmem_limit_bytes=32 * 1024 * 1024):
    """data: (B, input_dim). fused_params: {'wc','bc','w2','b2'} (see init_params)."""
    B, D_in = data.shape
    out_dtype = data.dtype

    wc, bc = fused_params["wc"], fused_params["bc"]   # (D_in, H), (1, H)
    w2, b2 = fused_params["w2"], fused_params["b2"]   # (H, O),   (1, O)
    H, O = wc.shape[1], w2.shape[1]

    # Lane-dense row packing: P rows share one packed row so the output tile is
    # (tp, P*O) with P*O a multiple of 128 -> unmasked vst, dense output VMEM.
    if pack is None:
        pack = 128 // O if (O < 128 and 128 % O == 0) else 1
    P = int(pack)

    # Block-diagonal weights (tiny for these dims; precompute/jit in production).
    wc_k = _block_diag(wc, P)          # (P*D_in, P*H)
    w2_k = _block_diag(w2, P)          # (P*H,   P*O)
    bc_k = jnp.tile(bc, (1, P)) if P > 1 else bc     # (1, P*H) f32
    b2_k = jnp.tile(b2, (1, P)) if P > 1 else b2     # (1, P*O) f32

    # Optional bf16 matmul operands (biases / epilogue stay f32).
    if compute_dtype is not None:
        data = data.astype(compute_dtype)
        wc_k = wc_k.astype(compute_dtype)
        w2_k = w2_k.astype(compute_dtype)

    # Batch tiling: tiles are multiples of row_align = P*8 original rows so packed
    # rows stay 8-sublane aligned. Large default tile amortizes ~0.35 us/step.
    row_align = P * 8
    n_align = pl.cdiv(B, row_align)                       # batch in row_align units
    tb_units = max(1, min(int(tb) // row_align, n_align))
    # If one tile would cover the whole batch, split in two so ("parallel",)
    # actually gives the second TensorCore work on v7x.
    if tb_units >= n_align and n_align >= 2:
        tb_units = pl.cdiv(n_align, 2)
    tb = tb_units * row_align
    B_pad = pl.cdiv(B, tb) * tb
    if B_pad != B:
        data = jnp.pad(data, ((0, B_pad - B), (0, 0)))

    Bp = B_pad // P                    # packed rows
    tp = tb // P                       # packed tile rows (multiple of 8)
    grid = (Bp // tp,)

    data_p = data.reshape(Bp, P * D_in)                   # row-major pack (free)

    # Grid-invariant weights: fully resident in VMEM (no tiling / double-buffer).
    resident = pl.BlockSpec(memory_space=pltpu.MemorySpace.VMEM)

    itemsize = lambda a: a.dtype.itemsize
    cost = pl.CostEstimate(
        flops=2 * Bp * ((P * D_in) * (P * H) + (P * H) * (P * O)),
        transcendentals=0,
        bytes_accessed=(data_p.size * itemsize(data_p)
                        + Bp * P * O * jnp.dtype(out_dtype).itemsize
                        + wc_k.size * itemsize(wc_k) + w2_k.size * itemsize(w2_k)
                        + bc_k.size * itemsize(bc_k) + b2_k.size * itemsize(b2_k)),
    )

    out = pl.pallas_call(
        _linfuse_kernel,
        out_shape=jax.ShapeDtypeStruct((Bp, P * O), out_dtype),
        grid_spec=pltpu.PrefetchScalarGridSpec(
            num_scalar_prefetch=0,
            grid=grid,
            in_specs=[
                pl.BlockSpec((tp, P * D_in), lambda i: (i, 0)),   # streamed data tile
                resident,                                          # Wc_blk
                resident,                                          # bc_blk
                resident,                                          # W2_blk
                resident,                                          # b2_blk
            ],
            out_specs=pl.BlockSpec((tp, P * O), lambda i: (i, 0)),
        ),
        compiler_params=pltpu.CompilerParams(
            dimension_semantics=("parallel",),
            vmem_limit_bytes=vmem_limit_bytes),
        cost_estimate=cost,
    )(data_p, wc_k, bc_k, w2_k, b2_k)

    out = out.reshape(B_pad, O)                           # row-major unpack (free)
    return out[:B] if B_pad != B else out


def init_params(key, input_dim, fuse_dim, hidden_dim, output_dim):
    """Deterministic synthetic weights (uniform, roughly PyTorch-Linear scaled).

    Returns (raw, fused):
      raw   = unfused weights (used by the pure-JAX reference),
      fused = {'wc','bc','w2','b2'} with the fuse linear folded into layer 0.
    """
    ks = jax.random.split(key, 6)

    def lin(kw, kb, fan_in, fan_out):
        bound = 1.0 / jnp.sqrt(fan_in)
        w = jax.random.uniform(kw, (fan_in, fan_out), jnp.float32, -bound, bound)
        b = jax.random.uniform(kb, (1, fan_out), jnp.float32, -bound, bound)
        return w, b

    # TODO(synk): real fuse_model is a MiltyModalLinear loaded from a checkpoint;
    # here it is a deterministic synthetic Linear(input_dim -> fuse_dim).
    wf, bf = lin(ks[0], ks[1], input_dim, fuse_dim)
    w1, b1 = lin(ks[2], ks[3], fuse_dim + input_dim, hidden_dim)
    w2, b2 = lin(ks[4], ks[5], hidden_dim, output_dim)

    w1f, w1d = w1[:fuse_dim, :], w1[fuse_dim:, :]
    raw = {"wf": wf, "bf": bf, "w1f": w1f, "w1d": w1d, "b1": b1, "w2": w2, "b2": b2}

    # Algebraic fold (exact at inference: dropout=0, .detach() is a forward no-op):
    #   concat([x@wf + bf, x]) @ W1 + b1 == x @ (wf@W1f + W1d) + (bf@W1f + b1)
    fused = {
        "wc": wf @ w1f + w1d,          # (input_dim, hidden)
        "bc": bf @ w1f + b1,           # (1, hidden)
        "w2": w2, "b2": b2,
    }
    return raw, fused


def lin_fuse_reference(data, raw):
    fuse = data @ raw["wf"] + raw["bf"]
    cat = jnp.concatenate([fuse, data], axis=1)
    w1 = jnp.concatenate([raw["w1f"], raw["w1d"]], axis=0)
    h = jnp.maximum(cat @ w1 + raw["b1"], 0.0)
    return h @ raw["w2"] + raw["b2"]


if __name__ == "__main__":
    # Shapes consistent with the module: input_dim=32, fuse_dim=16,
    # hidden_dim = -1 -> fuse_dim + input_dim = 48, output_dim=8.
    D_in, F, O = 32, 16, 8
    H = D_in + F

    key = jax.random.PRNGKey(0)
    k_data, k_params, k_big = jax.random.split(key, 3)
    raw, fused = init_params(k_params, D_in, F, H, O)

    # Case 1: small batch, explicit f32 path (tight tolerance), exercises padding
    # up to one 128-row-aligned packed tile.
    B = 8
    data = jax.random.normal(k_data, (B, D_in), jnp.float32)
    out = jax.block_until_ready(lin_fuse_forward(data, fused, compute_dtype=None))
    ref = lin_fuse_reference(data, raw)
    assert out.shape == (B, O)
    assert jnp.allclose(out, ref, atol=1e-4, rtol=1e-3)

    # Case 2: non-multiple batch exercising padding, row-packing, a >=2-step
    # parallel grid, and the default bf16 streaming path (looser tolerance).
    B2 = 1000
    data2 = jax.random.normal(k_big, (B2, D_in), jnp.float32)
    out2 = jax.block_until_ready(lin_fuse_forward(data2, fused))
    ref2 = lin_fuse_reference(data2, raw)
    assert out2.shape == (B2, O)
    assert jnp.allclose(out2, ref2, atol=5e-2, rtol=5e-2)

    print("KERNEL_OK")
</pallas_src>

<mosaic_0001>
module attributes {stable_mosaic.version = 11 : i64} {
  func.func @_linfuse_kernel(%arg0: i32, %arg1: memref<8x512xf32, #tpu.memory_space<vmem>>, %arg2: memref<512x768xf32, #tpu.memory_space<vmem>>, %arg3: memref<1x768xf32, #tpu.memory_space<vmem>>, %arg4: memref<768x128xf32, #tpu.memory_space<vmem>>, %arg5: memref<1x128xf32, #tpu.memory_space<vmem>>, %arg6: memref<8x128xf32, #tpu.memory_space<vmem>>) attributes {dimension_semantics = [#tpu.dimension_semantics<parallel>], iteration_bounds = array<i64: 1>, scalar_prefetch = 0 : i64, scratch_operands = 0 : i64, tpu.core_type = #tpu.core_type<tc>, window_params = [{transform_indices = @transform_0, window_bounds = array<i64: 8, 512>}, {pipeline_mode = #tpu.pipeline_mode<synchronous>, transform_indices = @transform_1, window_bounds = array<i64: 512, 768>}, {pipeline_mode = #tpu.pipeline_mode<synchronous>, transform_indices = @transform_2, window_bounds = array<i64: 1, 768>}, {pipeline_mode = #tpu.pipeline_mode<synchronous>, transform_indices = @transform_3, window_bounds = array<i64: 768, 128>}, {pipeline_mode = #tpu.pipeline_mode<synchronous>, transform_indices = @transform_4, window_bounds = array<i64: 1, 128>}, {transform_indices = @transform_5, window_bounds = array<i64: 8, 128>}]} {
    %c0 = arith.constant 0 : index
    %c0_0 = arith.constant 0 : index
    %0 = vector.load %arg1[%c0, %c0_0] : memref<8x512xf32, #tpu.memory_space<vmem>>, vector<8x512xf32>
    %c0_1 = arith.constant 0 : index
    %c0_2 = arith.constant 0 : index
    %1 = vector.load %arg2[%c0_1, %c0_2] : memref<512x768xf32, #tpu.memory_space<vmem>>, vector<512x768xf32>
    %cst = arith.constant dense<0.000000e+00> : vector<8x768xf32>
    %2 = tpu.matmul %0, %1, %cst {dimension_numbers = #tpu.dot_dimension_numbers<[1], [0], [0], [1], [0, 0, 1, 1], [], []>} : vector<8x512xf32>, vector<512x768xf32>, vector<8x768xf32> -> vector<8x768xf32>
    %c0_3 = arith.constant 0 : index
    %c0_4 = arith.constant 0 : index
    %3 = vector.load %arg3[%c0_3, %c0_4] : memref<1x768xf32, #tpu.memory_space<vmem>>, vector<1x768xf32>
    %4 = vector.broadcast %3 : vector<1x768xf32> to vector<8x768xf32>
    %5 = arith.addf %2, %4 : vector<8x768xf32>
    %cst_5 = arith.constant 0.000000e+00 : f32
    %6 = vector.broadcast %cst_5 : f32 to vector<8x768xf32>
    %7 = arith.maximumf %5, %6 : vector<8x768xf32>
    %c0_6 = arith.constant 0 : index
    %c0_7 = arith.constant 0 : index
    %8 = vector.load %arg4[%c0_6, %c0_7] : memref<768x128xf32, #tpu.memory_space<vmem>>, vector<768x128xf32>
    %cst_8 = arith.constant dense<0.000000e+00> : vector<8x128xf32>
    %9 = tpu.matmul %7, %8, %cst_8 {dimension_numbers = #tpu.dot_dimension_numbers<[1], [0], [0], [1], [0, 0, 1, 1], [], []>} : vector<8x768xf32>, vector<768x128xf32>, vector<8x128xf32> -> vector<8x128xf32>
    %c0_9 = arith.constant 0 : index
    %c0_10 = arith.constant 0 : index
    %10 = vector.load %arg5[%c0_9, %c0_10] : memref<1x128xf32, #tpu.memory_space<vmem>>, vector<1x128xf32>
    %11 = vector.broadcast %10 : vector<1x128xf32> to vector<8x128xf32>
    %12 = arith.addf %9, %11 : vector<8x128xf32>
    %c0_11 = arith.constant 0 : index
    %c0_12 = arith.constant 0 : index
    %13 = vector.load %arg6[%c0_11, %c0_12] : memref<8x128xf32, #tpu.memory_space<vmem>>, vector<8x128xf32>
    tpu.vector_store %arg6[%c0_11, %c0_12], %12 {strides = array<i32>} : memref<8x128xf32, #tpu.memory_space<vmem>>, vector<8x128xf32>,
    return
  }
  func.func @transform_0(%arg0: i32) -> (i32, i32) {
    %c0_i32 = arith.constant 0 : i32
    %c0_i32_0 = arith.constant 0 : i32
    return %arg0, %c0_i32 : i32, i32
  }
  func.func @transform_1(%arg0: i32) -> (i32, i32) {
    %c0_i32 = arith.constant 0 : i32
    %c0_i32_0 = arith.constant 0 : i32
    %c0_i32_1 = arith.constant 0 : i32
    return %c0_i32, %c0_i32_0 : i32, i32
  }
  func.func @transform_2(%arg0: i32) -> (i32, i32) {
    %c0_i32 = arith.constant 0 : i32
    %c0_i32_0 = arith.constant 0 : i32
    %c0_i32_1 = arith.constant 0 : i32
    return %c0_i32, %c0_i32_0 : i32, i32
  }
  func.func @transform_3(%arg0: i32) -> (i32, i32) {
    %c0_i32 = arith.constant 0 : i32
    %c0_i32_0 = arith.constant 0 : i32
    %c0_i32_1 = arith.constant 0 : i32
    return %c0_i32, %c0_i32_0 : i32, i32
  }
  func.func @transform_4(%arg0: i32) -> (i32, i32) {
    %c0_i32 = arith.constant 0 : i32
    %c0_i32_0 = arith.constant 0 : i32
    %c0_i32_1 = arith.constant 0 : i32
    return %c0_i32, %c0_i32_0 : i32, i32
  }
  func.func @transform_5(%arg0: i32) -> (i32, i32) {
    %c0_i32 = arith.constant 0 : i32
    %c0_i32_0 = arith.constant 0 : i32
    return %arg0, %c0_i32 : i32, i32
  }
}

</mosaic_0001>

<bundles_post_ra>
// kernel: tpu_custom_call.1
= control target key start
LH: loop header
LB: loop body
LE: loop exit
PB: predicated region body
PF: predicated region fallthrough
CT: control target
= control target key end

     0   :  { %10 = vsyncpa [#allocation3], 0  ;;  %s1604_s0 = inlined_call_operand.hbm [shape: f32[8,512], index: 0, kind: input, shape index: {}]   ;;  %s1605_s1 = inlined_call_operand.hbm [shape: f32[512,768], index: 1, kind: input, shape index: {}]   ;;  %s1606_s2 = inlined_call_operand.hbm [shape: f32[1,768], index: 2, kind: input, shape index: {}]   ;;  %s1607_s3 = inlined_call_operand.hbm [shape: f32[768,128], index: 3, kind: input, shape index: {}]   ;;  %s1608_s4 = inlined_call_operand.hbm [shape: f32[1,128], index: 4, kind: input, shape index: {}]   ;;  %s1609_s5 = inlined_call_operand.hbm [shape: f32[8,128], index: 5, kind: output, shape index: {}]  }
   0x1   :  { %11 = vsyncpa [#allocation6], 0 }
   0x2   :  { %12 = vsyncpa [#allocation9], 0 }
   0x3   :  { %13 = vsyncpa [#allocation4], 0  ;;  %s1514_s18 = smov [#allocation5]  }
   0x4   :  { %s29_s19 = sshll.u32 %s1514_s18, 4  ;;  %s30_s19 = int_to_ptr.vmem [resolvable:$true] %s29_s19 }
   0x5   :  { %s1394_s20 = scalar_lea.vmem %s30_s19, 49152  ;;  %p1399_p1 = scmp.lt.s32.totalorder %s30_s19, %s30_s19 }
   0x6   :  { %p1395_p0 = scmp.ne.s32.totalorder %s30_s19, %s1394_s20  ;;  %p1400_p2 = scmp.lt.s32.totalorder %s1394_s20, %s1394_s20 }
   0x8   :  { %p1401_p3 = por %p1400_p2, %p1399_p1 }
   0xa   :  { %p1402_p4 = pnand %p1401_p3, %p1395_p0 }
   0xc   :  { %1405 = shalt.err (!%p1402_p4)
}
   0xd   :  { %s1515_s21 = smov 768   ;;  %s1516_s22 = smov 48  }
   0xe   :  { %35 = dma.hbm_to_vmem [thread:$0]  %s1605_s1, 49152, %s30_s19, [#allocation6], %s1515_s21, %s1515_s21, %s1516_s22  }
   0xf   :  { %s1517_s25 = smov [#allocation8]  }
  0x10   :  { %s51_s26 = sshll.u32 %s1517_s25, 4  ;;  %s52_s26 = int_to_ptr.vmem [resolvable:$true] %s51_s26 }
  0x11   :  { %s1414_s27 = scalar_lea.vmem %s52_s26, 12288  ;;  %p1419_p6 = scmp.lt.s32.totalorder %s52_s26, %s52_s26 }
  0x12   :  { %p1415_p5 = scmp.ne.s32.totalorder %s52_s26, %s1414_s27  ;;  %p1420_p7 = scmp.lt.s32.totalorder %s1414_s27, %s1414_s27 }
  0x14   :  { %p1421_p8 = por %p1420_p7, %p1419_p6 }
  0x16   :  { %p1422_p9 = pnand %p1421_p8, %p1415_p5 }
  0x18   :  { %1425 = shalt.err (!%p1422_p9)
}
  0x19   :  { %s1518_s28 = smov 128   ;;  %s1519_s29 = smov 8  }
  0x1a   :  { %57 = dma.hbm_to_vmem [thread:$0]  %s1607_s3, 12288, %s52_s26, [#allocation9], %s1518_s28, %s1518_s28, %s1519_s29  }
  0x1b   :  { %s1520_s7 = smov [#allocation2]   ;;  %s1521_s9 = smov [#allocation7]  }
  0x1c   :  { %s20_s8 = sshll.u32 %s1520_s7, 4  ;;  %s42_s1 = sshll.u32 %s1521_s9, 4  ;;  %s21_s8 = int_to_ptr.vmem [resolvable:$true] %s20_s8  ;;  %s43_s1 = int_to_ptr.vmem [resolvable:$true] %s42_s1 }
  0x1d   :  { %s1434_s10 = scalar_lea.vmem %s21_s8, 512  ;;  %p1439_p11 = scmp.lt.s32.totalorder %s21_s8, %s21_s8 }
  0x1e   :  { %p1435_p10 = scmp.ne.s32.totalorder %s21_s8, %s1434_s10  ;;  %p1440_p12 = scmp.lt.s32.totalorder %s1434_s10, %s1434_s10 }
  0x20   :  { %p1441_p13 = por %p1440_p12, %p1439_p11 }
  0x22   :  { %p1442_p0 = pnand %p1441_p13, %p1435_p10 }
  0x24   :  { %1445 = shalt.err (!%p1442_p0)
}
  0x25   :  { %23 = dma.hbm_to_vmem [thread:$0]  %s1604_s0, 512, %s21_s8, [#allocation3]  }
  0x26   :  { %s1454_s13 = scalar_lea.vmem %s43_s1, 96  ;;  %p1459_p2 = scmp.lt.s32.totalorder %s43_s1, %s43_s1 }
  0x27   :  { %p1455_p1 = scmp.ne.s32.totalorder %s43_s1, %s1454_s13  ;;  %p1460_p3 = scmp.lt.s32.totalorder %s1454_s13, %s1454_s13 }
  0x29   :  { %p1461_p4 = por %p1460_p3, %p1459_p2 }
  0x2b   :  { %p1462_p5 = pnand %p1461_p4, %p1455_p1 }
  0x2d   :  { %1465 = shalt.err (!%p1462_p5)
}
  0x2e   :  { %45 = dma.hbm_to_vmem [thread:$0]  %s1606_s2, 96, %s43_s1, [#allocation6]  }
  0x2f   :  { %s1522_s15 = smov [#allocation10]  }
  0x30   :  { %s64_s16 = sshll.u32 %s1522_s15, 4  ;;  %s65_s16 = int_to_ptr.vmem [resolvable:$true] %s64_s16 }
  0x31   :  { %s1474_s17 = scalar_lea.vmem %s65_s16, 16  ;;  %s1478_s18 = scalar_lea.vmem %s65_s16, 32 }
  0x32   :  { %p1475_p6 = scmp.ne.s32.totalorder %s65_s16, %s1474_s17  ;;  %p1479_p7 = scmp.lt.s32.totalorder %s65_s16, %s65_s16 }
  0x33   :  { %p1480_p8 = scmp.lt.s32.totalorder %s1478_s18, %s1474_s17 }
  0x35   :  { %p1481_p9 = por %p1480_p8, %p1479_p7 }
  0x37   :  { %p1482_p10 = pnand %p1481_p9, %p1475_p6 }
  0x39   :  { %1485 = shalt.err (!%p1482_p10)
}
  0x3a   :  { %67 = dma.hbm_to_vmem [thread:$0]  %s1608_s4, 16, %s65_s16, [#allocation9]  }
  0x3b   :  { %1506 = dma.done.wait [#allocation3], 512  }
  0x3c   :  { %1507 = vsyncadd [#allocation3], 4294966784 }
  0x3d   :  { %1508 = dma.done.wait [#allocation6], 49248  }
  0x3e   :  { %1509 = vsyncadd [#allocation6], 4294918048 }
  0x3f   :  { %1510 = dma.done.wait [#allocation9], 12304  }
  0x40   :  { %1511 = vsyncadd [#allocation9], 4294954992  ;;  %v178_v0 = vld [vmem:[#allocation5 + $0x2d8] sm:$0xff]  ;;  %v177_v2 = vld [vmem:[#allocation5 + $0x2d0] sm:$0xff]  ;;  %s1523_s2 = smov [#allocation11]  }
  0x41   :  { %v370_v1 = vld [vmem:[#allocation5 + $0x8d8] sm:$0xff]  ;;  %503 = vmatprep.subr.mxu0 %v178_v0  ;;  %v369_v3 = vld [vmem:[#allocation5 + $0x8d0] sm:$0xff]  ;;  %v172_v4 = vld [vmem:[#allocation5 + $0x2a8] sm:$0xff]  ;;  %s1255_s4 = sshll.u32 %s1523_s2, 4  ;;  %s1256_s4 = int_to_ptr.vmem [resolvable:$true] %s1255_s4 }
  0x42   :  { %574 = vmatprep.subr.mxu1 %v370_v1  ;;  %v364_v5 = vld [vmem:[#allocation5 + $0x8a8] sm:$0xff]  ;;  %504 = vmatpush1.msra.mxu0 %v177_v2  ;;  %v171_v6 = vld [vmem:[#allocation5 + $0x2a0] sm:$0xff]  ;;  %v166_v8 = vld [vmem:[#allocation5 + $0x278] sm:$0xff]  ;;  %s1486_s20 = scalar_lea.vmem %s1256_s4, 128  ;;  %p1491_p12 = scmp.lt.s32.totalorder %s1256_s4, %s1256_s4 }
  0x43   :  { %575 = vmatpush1.msra.mxu1 %v369_v3  ;;  %v363_v7 = vld [vmem:[#allocation5 + $0x8a0] sm:$0xff]  ;;  %505 = vmatprep.subr.mxu0 %v172_v4  ;;  %v358_v9 = vld [vmem:[#allocation5 + $0x878] sm:$0xff]  ;;  %v165_v10 = vld [vmem:[#allocation5 + $0x270] sm:$0xff]  ;;  %p1487_p11 = scmp.ne.s32.totalorder %s1256_s4, %s1486_s20  ;;  %p1492_p13 = scmp.lt.s32.totalorder %s1486_s20, %s1486_s20 }
  0x44   :  { %576 = vmatprep.subr.mxu1 %v364_v5  ;;  %v357_v11 = vld [vmem:[#allocation5 + $0x870] sm:$0xff]  ;;  %506 = vmatpush1.msra.mxu0 %v171_v6  ;;  %v160_v12 = vld [vmem:[#allocation5 + $0x248] sm:$0xff]  ;;  %v159_v14 = vld [vmem:[#allocation5 + $0x240] sm:$0xff] }
  0x45   :  { %577 = vmatpush1.msra.mxu1 %v363_v7  ;;  %v352_v13 = vld [vmem:[#allocation5 + $0x848] sm:$0xff]  ;;  %507 = vmatprep.subr.mxu0 %v166_v8  ;;  %v351_v15 = vld [vmem:[#allocation5 + $0x840] sm:$0xff]  ;;  %v154_v16 = vld [vmem:[#allocation5 + $0x218] sm:$0xff]  ;;  %p1493_p0 = por %p1492_p13, %p1491_p12 }
  0x46   :  { %578 = vmatprep.subr.mxu1 %v358_v9  ;;  %508 = vmatpush1.msra.mxu0 %v165_v10  ;;  %v346_v17 = vld [vmem:[#allocation5 + $0x818] sm:$0xff]  ;;  %v153_v18 = vld [vmem:[#allocation5 + $0x210] sm:$0xff]  ;;  %v148_v20 = vld [vmem:[#allocation5 + $0x1e8] sm:$0xff] }
  0x47   :  { %579 = vmatpush1.msra.mxu1 %v357_v11  ;;  %509 = vmatprep.subr.mxu0 %v160_v12  ;;  %v345_v19 = vld [vmem:[#allocation5 + $0x810] sm:$0xff]  ;;  %v340_v21 = vld [vmem:[#allocation5 + $0x7e8] sm:$0xff]  ;;  %v147_v22 = vld [vmem:[#allocation5 + $0x1e0] sm:$0xff]  ;;  %p1494_p1 = pnand %p1493_p0, %p1487_p11 }
  0x48   :  { %580 = vmatprep.subr.mxu1 %v352_v13  ;;  %510 = vmatpush1.msra.mxu0 %v159_v14  ;;  %v339_v23 = vld [vmem:[#allocation5 + $0x7e0] sm:$0xff]  ;;  %v142_v24 = vld [vmem:[#allocation5 + $0x1b8] sm:$0xff]  ;;  %v141_v26 = vld [vmem:[#allocation5 + $0x1b0] sm:$0xff] }
  0x49   :  { %581 = vmatpush1.msra.mxu1 %v351_v15  ;;  %511 = vmatprep.subr.mxu0 %v154_v16  ;;  %v334_v25 = vld [vmem:[#allocation5 + $0x7b8] sm:$0xff]  ;;  %v333_v27 = vld [vmem:[#allocation5 + $0x7b0] sm:$0xff]  ;;  %v136_v28 = vld [vmem:[#allocation5 + $0x188] sm:$0xff] }
  0x4a   :  { %582 = vmatprep.subr.mxu1 %v346_v17  ;;  %512 = vmatpush1.msra.mxu0 %v153_v18  ;;  %v328_v29 = vld [vmem:[#allocation5 + $0x788] sm:$0xff]  ;;  %v135_v30 = vld [vmem:[#allocation5 + $0x180] sm:$0xff]  ;;  %v130_v32 = vld [vmem:[#allocation5 + $0x158] sm:$0xff] }
  0x4b   :  { %583 = vmatpush1.msra.mxu1 %v345_v19  ;;  %513 = vmatprep.subr.mxu0 %v148_v20  ;;  %v327_v31 = vld [vmem:[#allocation5 + $0x780] sm:$0xff]  ;;  %v322_v33 = vld [vmem:[#allocation5 + $0x758] sm:$0xff]  ;;  %v129_v34 = vld [vmem:[#allocation5 + $0x150] sm:$0xff] }
  0x4c   :  { %584 = vmatprep.subr.mxu1 %v340_v21  ;;  %514 = vmatpush1.msra.mxu0 %v147_v22  ;;  %v321_v35 = vld [vmem:[#allocation5 + $0x750] sm:$0xff]  ;;  %v124_v36 = vld [vmem:[#allocation5 + $0x128] sm:$0xff]  ;;  %v123_v38 = vld [vmem:[#allocation5 + $0x120] sm:$0xff] }
  0x4d   :  { %585 = vmatpush1.msra.mxu1 %v339_v23  ;;  %515 = vmatprep.subr.mxu0 %v142_v24  ;;  %v316_v37 = vld [vmem:[#allocation5 + $0x728] sm:$0xff]  ;;  %v315_v39 = vld [vmem:[#allocation5 + $0x720] sm:$0xff]  ;;  %v118_v40 = vld [vmem:[#allocation5 + $0xf8] sm:$0xff] }
  0x4e   :  { %586 = vmatprep.subr.mxu1 %v334_v25  ;;  %516 = vmatpush1.msra.mxu0 %v141_v26  ;;  %v310_v41 = vld [vmem:[#allocation5 + $0x6f8] sm:$0xff]  ;;  %v117_v42 = vld [vmem:[#allocation5 + $0xf0] sm:$0xff]  ;;  %v112_v44 = vld [vmem:[#allocation5 + $0xc8] sm:$0xff] }
  0x4f   :  { %587 = vmatpush1.msra.mxu1 %v333_v27  ;;  %517 = vmatprep.subr.mxu0 %v136_v28  ;;  %v309_v43 = vld [vmem:[#allocation5 + $0x6f0] sm:$0xff]  ;;  %v304_v45 = vld [vmem:[#allocation5 + $0x6c8] sm:$0xff]  ;;  %v111_v46 = vld [vmem:[#allocation5 + $0xc0] sm:$0xff] }
  0x50   :  { %588 = vmatprep.subr.mxu1 %v328_v29  ;;  %518 = vmatpush1.msra.mxu0 %v135_v30  ;;  %v303_v47 = vld [vmem:[#allocation5 + $0x6c0] sm:$0xff]  ;;  %v106_v48 = vld [vmem:[#allocation5 + $0x98] sm:$0xff]  ;;  %v105_v50 = vld [vmem:[#allocation5 + $0x90] sm:$0xff] }
  0x51   :  { %589 = vmatpush1.msra.mxu1 %v327_v31  ;;  %519 = vmatprep.subr.mxu0 %v130_v32  ;;  %v298_v49 = vld [vmem:[#allocation5 + $0x698] sm:$0xff]  ;;  %v297_v51 = vld [vmem:[#allocation5 + $0x690] sm:$0xff]  ;;  %v100_v52 = vld [vmem:[#allocation5 + $0x68] sm:$0xff] }
  0x52   :  { %590 = vmatprep.subr.mxu1 %v322_v33  ;;  %520 = vmatpush1.msra.mxu0 %v129_v34  ;;  %v292_v53 = vld [vmem:[#allocation5 + $0x668] sm:$0xff]  ;;  %v99_v54 = vld [vmem:[#allocation5 + $0x60] sm:$0xff]  ;;  %v94_v56 = vld [vmem:[#allocation5 + $0x38] sm:$0xff] }
  0x53   :  { %591 = vmatpush1.msra.mxu1 %v321_v35  ;;  %521 = vmatprep.subr.mxu0 %v124_v36  ;;  %v291_v55 = vld [vmem:[#allocation5 + $0x660] sm:$0xff]  ;;  %v286_v57 = vld [vmem:[#allocation5 + $0x638] sm:$0xff]  ;;  %v93_v58 = vld [vmem:[#allocation5 + $0x30] sm:$0xff] }
  0x54   :  { %592 = vmatprep.subr.mxu1 %v316_v37  ;;  %522 = vmatpush1.msra.mxu0 %v123_v38  ;;  %v285_v59 = vld [vmem:[#allocation5 + $0x630] sm:$0xff]  ;;  %v88_v60 = vld [vmem:[#allocation5 + $0x8] sm:$0xff]  ;;  %v87_v62 = vld [vmem:[#allocation5] sm:$0xff] }
  0x55   :  { %593 = vmatpush1.msra.mxu1 %v315_v39  ;;  %523 = vmatprep.subr.mxu0 %v118_v40  ;;  %v280_v61 = vld [vmem:[#allocation5 + $0x608] sm:$0xff]  ;;  %v279_v63 = vld [vmem:[#allocation5 + $0x600] sm:$0xff]  ;;  %v274_v0 = vld [vmem:[#allocation5 + $0x5d8] sm:$0xff] }
  0x56   :  { %594 = vmatprep.subr.mxu1 %v310_v41  ;;  %524 = vmatpush1.msra.mxu0 %v117_v42  ;;  %v466_v1 = vld [vmem:[#allocation5 + $0xbd8] sm:$0xff]  ;;  %v273_v2 = vld [vmem:[#allocation5 + $0x5d0] sm:$0xff]  ;;  %v268_v4 = vld [vmem:[#allocation5 + $0x5a8] sm:$0xff] }
  0x57   :  { %595 = vmatpush1.msra.mxu1 %v309_v43  ;;  %525 = vmatprep.subr.mxu0 %v112_v44  ;;  %v465_v3 = vld [vmem:[#allocation5 + $0xbd0] sm:$0xff]  ;;  %v460_v5 = vld [vmem:[#allocation5 + $0xba8] sm:$0xff]  ;;  %v267_v6 = vld [vmem:[#allocation5 + $0x5a0] sm:$0xff] }
  0x58   :  { %596 = vmatprep.subr.mxu1 %v304_v45  ;;  %526 = vmatpush1.msra.mxu0 %v111_v46  ;;  %v459_v7 = vld [vmem:[#allocation5 + $0xba0] sm:$0xff]  ;;  %v262_v8 = vld [vmem:[#allocation5 + $0x578] sm:$0xff]  ;;  %v261_v10 = vld [vmem:[#allocation5 + $0x570] sm:$0xff] }
  0x59   :  { %597 = vmatpush1.msra.mxu1 %v303_v47  ;;  %527 = vmatprep.subr.mxu0 %v106_v48  ;;  %v454_v9 = vld [vmem:[#allocation5 + $0xb78] sm:$0xff]  ;;  %v453_v11 = vld [vmem:[#allocation5 + $0xb70] sm:$0xff]  ;;  %v256_v12 = vld [vmem:[#allocation5 + $0x548] sm:$0xff] }
  0x5a   :  { %598 = vmatprep.subr.mxu1 %v298_v49  ;;  %528 = vmatpush1.msra.mxu0 %v105_v50  ;;  %v448_v13 = vld [vmem:[#allocation5 + $0xb48] sm:$0xff]  ;;  %v255_v14 = vld [vmem:[#allocation5 + $0x540] sm:$0xff]  ;;  %v250_v16 = vld [vmem:[#allocation5 + $0x518] sm:$0xff] }
  0x5b   :  { %599 = vmatpush1.msra.mxu1 %v297_v51  ;;  %529 = vmatprep.subr.mxu0 %v100_v52  ;;  %v447_v15 = vld [vmem:[#allocation5 + $0xb40] sm:$0xff]  ;;  %v442_v17 = vld [vmem:[#allocation5 + $0xb18] sm:$0xff]  ;;  %v249_v18 = vld [vmem:[#allocation5 + $0x510] sm:$0xff] }
  0x5c   :  { %600 = vmatprep.subr.mxu1 %v292_v53  ;;  %530 = vmatpush1.msra.mxu0 %v99_v54  ;;  %v441_v19 = vld [vmem:[#allocation5 + $0xb10] sm:$0xff]  ;;  %v244_v20 = vld [vmem:[#allocation5 + $0x4e8] sm:$0xff]  ;;  %v243_v22 = vld [vmem:[#allocation5 + $0x4e0] sm:$0xff] }
  0x5d   :  { %601 = vmatpush1.msra.mxu1 %v291_v55  ;;  %531 = vmatprep.subr.mxu0 %v94_v56  ;;  %v436_v21 = vld [vmem:[#allocation5 + $0xae8] sm:$0xff]  ;;  %v435_v23 = vld [vmem:[#allocation5 + $0xae0] sm:$0xff]  ;;  %v238_v24 = vld [vmem:[#allocation5 + $0x4b8] sm:$0xff] }
  0x5e   :  { %602 = vmatprep.subr.mxu1 %v286_v57  ;;  %532 = vmatpush1.msra.mxu0 %v93_v58  ;;  %v430_v25 = vld [vmem:[#allocation5 + $0xab8] sm:$0xff]  ;;  %v237_v26 = vld [vmem:[#allocation5 + $0x4b0] sm:$0xff]  ;;  %v232_v28 = vld [vmem:[#allocation5 + $0x488] sm:$0xff] }
  0x5f   :  { %603 = vmatpush1.msra.mxu1 %v285_v59  ;;  %533 = vmatprep.subr.mxu0 %v88_v60  ;;  %v429_v27 = vld [vmem:[#allocation5 + $0xab0] sm:$0xff]  ;;  %v424_v29 = vld [vmem:[#allocation5 + $0xa88] sm:$0xff]  ;;  %v231_v30 = vld [vmem:[#allocation5 + $0x480] sm:$0xff] }
  0x60   :  { %604 = vmatprep.subr.mxu1 %v280_v61  ;;  %534 = vmatpush1.msra.mxu0 %v87_v62  ;;  %v423_v31 = vld [vmem:[#allocation5 + $0xa80] sm:$0xff]  ;;  %v226_v32 = vld [vmem:[#allocation5 + $0x458] sm:$0xff]  ;;  %v225_v34 = vld [vmem:[#allocation5 + $0x450] sm:$0xff] }
  0x61   :  { %605 = vmatpush1.msra.mxu1 %v279_v63  ;;  %535 = vmatprep.subr.mxu0 %v274_v0  ;;  %v418_v33 = vld [vmem:[#allocation5 + $0xa58] sm:$0xff]  ;;  %v417_v35 = vld [vmem:[#allocation5 + $0xa50] sm:$0xff]  ;;  %v220_v36 = vld [vmem:[#allocation5 + $0x428] sm:$0xff] }
  0x62   :  { %606 = vmatprep.subr.mxu1 %v466_v1  ;;  %536 = vmatpush2.msra.mxu0 %v273_v2  ;;  %v412_v37 = vld [vmem:[#allocation5 + $0xa28] sm:$0xff]  ;;  %v219_v38 = vld [vmem:[#allocation5 + $0x420] sm:$0xff]  ;;  %v214_v40 = vld [vmem:[#allocation5 + $0x3f8] sm:$0xff] }
  0x63   :  { %607 = vmatpush2.msra.mxu1 %v465_v3  ;;  %537 = vmatprep.subr.mxu0 %v268_v4  ;;  %v411_v39 = vld [vmem:[#allocation5 + $0xa20] sm:$0xff]  ;;  %v406_v41 = vld [vmem:[#allocation5 + $0x9f8] sm:$0xff]  ;;  %v213_v42 = vld [vmem:[#allocation5 + $0x3f0] sm:$0xff] }
  0x64   :  { %608 = vmatprep.subr.mxu1 %v460_v5  ;;  %538 = vmatpush2.msra.mxu0 %v267_v6  ;;  %v405_v43 = vld [vmem:[#allocation5 + $0x9f0] sm:$0xff]  ;;  %v208_v44 = vld [vmem:[#allocation5 + $0x3c8] sm:$0xff]  ;;  %v207_v46 = vld [vmem:[#allocation5 + $0x3c0] sm:$0xff] }
  0x65   :  { %609 = vmatpush2.msra.mxu1 %v459_v7  ;;  %539 = vmatprep.subr.mxu0 %v262_v8  ;;  %v400_v45 = vld [vmem:[#allocation5 + $0x9c8] sm:$0xff]  ;;  %v399_v47 = vld [vmem:[#allocation5 + $0x9c0] sm:$0xff]  ;;  %v202_v48 = vld [vmem:[#allocation5 + $0x398] sm:$0xff] }
  0x66   :  { %610 = vmatprep.subr.mxu1 %v454_v9  ;;  %540 = vmatpush2.msra.mxu0 %v261_v10  ;;  %v394_v49 = vld [vmem:[#allocation5 + $0x998] sm:$0xff]  ;;  %v201_v50 = vld [vmem:[#allocation5 + $0x390] sm:$0xff]  ;;  %v196_v52 = vld [vmem:[#allocation5 + $0x368] sm:$0xff] }
  0x67   :  { %611 = vmatpush2.msra.mxu1 %v453_v11  ;;  %541 = vmatprep.subr.mxu0 %v256_v12  ;;  %v393_v51 = vld [vmem:[#allocation5 + $0x990] sm:$0xff]  ;;  %v388_v53 = vld [vmem:[#allocation5 + $0x968] sm:$0xff]  ;;  %v195_v54 = vld [vmem:[#allocation5 + $0x360] sm:$0xff] }
  0x68   :  { %612 = vmatprep.subr.mxu1 %v448_v13  ;;  %542 = vmatpush2.msra.mxu0 %v255_v14  ;;  %v387_v55 = vld [vmem:[#allocation5 + $0x960] sm:$0xff]  ;;  %v190_v56 = vld [vmem:[#allocation5 + $0x338] sm:$0xff]  ;;  %v189_v58 = vld [vmem:[#allocation5 + $0x330] sm:$0xff] }
  0x69   :  { %613 = vmatpush2.msra.mxu1 %v447_v15  ;;  %543 = vmatprep.subr.mxu0 %v250_v16  ;;  %v382_v57 = vld [vmem:[#allocation5 + $0x938] sm:$0xff]  ;;  %v381_v59 = vld [vmem:[#allocation5 + $0x930] sm:$0xff]  ;;  %v184_v60 = vld [vmem:[#allocation5 + $0x308] sm:$0xff] }
  0x6a   :  { %614 = vmatprep.subr.mxu1 %v442_v17  ;;  %544 = vmatpush2.msra.mxu0 %v249_v18  ;;  %v376_v61 = vld [vmem:[#allocation5 + $0x908] sm:$0xff]  ;;  %v183_v62 = vld [vmem:[#allocation5 + $0x300] sm:$0xff]  ;;  %v1573_v2 = vld [vmem:[#allocation2 + $0x18] sm:$0xff] }
  0x6b   :  { %615 = vmatpush2.msra.mxu1 %v441_v19  ;;  %545 = vmatprep.subr.mxu0 %v244_v20  ;;  %v1569_v63 = vld [vmem:[#allocation2 + $0x8] sm:$0xff]  ;;  %v375_v0 = vld [vmem:[#allocation5 + $0x900] sm:$0xff]  ;;  %v1576_v5 = vld [vmem:[#allocation2 + $0x10] sm:$0xff] }
  0x6c   :  { %616 = vmatprep.subr.mxu1 %v436_v21  ;;  %546 = vmatpush2.msra.mxu0 %v243_v22  ;;  %v1571_v1 = vld [vmem:[#allocation2] sm:$0xff]  ;;  %v180_v3 = vld [vmem:[#allocation5 + $0x2e8] sm:$0xff]  ;;  %v174_v8 = vld [vmem:[#allocation5 + $0x2b8] sm:$0xff] }
  0x6d   :  { %617 = vmatpush2.msra.mxu1 %v435_v23  ;;  %547 = vmatprep.subr.mxu0 %v238_v24  ;;  %v372_v4 = vld [vmem:[#allocation5 + $0x8e8] sm:$0xff]  ;;  %v179_v6 = vld [vmem:[#allocation5 + $0x2e0] sm:$0xff]  ;;  %v366_v9 = vld [vmem:[#allocation5 + $0x8b8] sm:$0xff] }
  0x6e   :  { %618 = vmatprep.subr.mxu1 %v430_v25  ;;  %548 = vmatpush2.msra.mxu0 %v237_v26  ;;  %v371_v7 = vld [vmem:[#allocation5 + $0x8e0] sm:$0xff]  ;;  %v173_v10 = vld [vmem:[#allocation5 + $0x2b0] sm:$0xff]  ;;  %v168_v12 = vld [vmem:[#allocation5 + $0x288] sm:$0xff] }
  0x6f   :  { %619 = vmatpush2.msra.mxu1 %v429_v27  ;;  %549 = vmatprep.subr.mxu0 %v232_v28  ;;  %v365_v11 = vld [vmem:[#allocation5 + $0x8b0] sm:$0xff]  ;;  %v360_v13 = vld [vmem:[#allocation5 + $0x888] sm:$0xff]  ;;  %v167_v14 = vld [vmem:[#allocation5 + $0x280] sm:$0xff] }
  0x70   :  { %620 = vmatprep.subr.mxu1 %v424_v29  ;;  %550 = vmatpush2.msra.mxu0 %v231_v30  ;;  %v359_v15 = vld [vmem:[#allocation5 + $0x880] sm:$0xff]  ;;  %v162_v16 = vld [vmem:[#allocation5 + $0x258] sm:$0xff]  ;;  %v161_v18 = vld [vmem:[#allocation5 + $0x250] sm:$0xff] }
  0x71   :  { %621 = vmatpush2.msra.mxu1 %v423_v31  ;;  %551 = vmatprep.subr.mxu0 %v226_v32  ;;  %v354_v17 = vld [vmem:[#allocation5 + $0x858] sm:$0xff]  ;;  %v353_v19 = vld [vmem:[#allocation5 + $0x850] sm:$0xff]  ;;  %v156_v20 = vld [vmem:[#allocation5 + $0x228] sm:$0xff] }
  0x72   :  { %622 = vmatprep.subr.mxu1 %v418_v33  ;;  %552 = vmatpush2.msra.mxu0 %v225_v34  ;;  %v348_v21 = vld [vmem:[#allocation5 + $0x828] sm:$0xff]  ;;  %v155_v22 = vld [vmem:[#allocation5 + $0x220] sm:$0xff]  ;;  %v150_v24 = vld [vmem:[#allocation5 + $0x1f8] sm:$0xff] }
  0x73   :  { %623 = vmatpush2.msra.mxu1 %v417_v35  ;;  %553 = vmatprep.subr.mxu0 %v220_v36  ;;  %v347_v23 = vld [vmem:[#allocation5 + $0x820] sm:$0xff]  ;;  %v342_v25 = vld [vmem:[#allocation5 + $0x7f8] sm:$0xff]  ;;  %v149_v26 = vld [vmem:[#allocation5 + $0x1f0] sm:$0xff] }
  0x74   :  { %624 = vmatprep.subr.mxu1 %v412_v37  ;;  %554 = vmatpush2.msra.mxu0 %v219_v38  ;;  %v341_v27 = vld [vmem:[#allocation5 + $0x7f0] sm:$0xff]  ;;  %v144_v28 = vld [vmem:[#allocation5 + $0x1c8] sm:$0xff]  ;;  %v143_v30 = vld [vmem:[#allocation5 + $0x1c0] sm:$0xff] }
  0x75   :  { %625 = vmatpush2.msra.mxu1 %v411_v39  ;;  %555 = vmatprep.subr.mxu0 %v214_v40  ;;  %v336_v29 = vld [vmem:[#allocation5 + $0x7c8] sm:$0xff]  ;;  %v335_v31 = vld [vmem:[#allocation5 + $0x7c0] sm:$0xff]  ;;  %v138_v32 = vld [vmem:[#allocation5 + $0x198] sm:$0xff] }
  0x76   :  { %626 = vmatprep.subr.mxu1 %v406_v41  ;;  %556 = vmatpush2.msra.mxu0 %v213_v42  ;;  %v330_v33 = vld [vmem:[#allocation5 + $0x798] sm:$0xff]  ;;  %v137_v34 = vld [vmem:[#allocation5 + $0x190] sm:$0xff]  ;;  %v132_v36 = vld [vmem:[#allocation5 + $0x168] sm:$0xff] }
  0x77   :  { %627 = vmatpush2.msra.mxu1 %v405_v43  ;;  %557 = vmatprep.subr.mxu0 %v208_v44  ;;  %v329_v35 = vld [vmem:[#allocation5 + $0x790] sm:$0xff]  ;;  %v324_v37 = vld [vmem:[#allocation5 + $0x768] sm:$0xff]  ;;  %v131_v38 = vld [vmem:[#allocation5 + $0x160] sm:$0xff] }
  0x78   :  { %628 = vmatprep.subr.mxu1 %v400_v45  ;;  %558 = vmatpush2.msra.mxu0 %v207_v46  ;;  %v323_v39 = vld [vmem:[#allocation5 + $0x760] sm:$0xff]  ;;  %v126_v40 = vld [vmem:[#allocation5 + $0x138] sm:$0xff]  ;;  %v125_v42 = vld [vmem:[#allocation5 + $0x130] sm:$0xff] }
  0x79   :  { %629 = vmatpush2.msra.mxu1 %v399_v47  ;;  %559 = vmatprep.subr.mxu0 %v202_v48  ;;  %v318_v41 = vld [vmem:[#allocation5 + $0x738] sm:$0xff]  ;;  %v317_v43 = vld [vmem:[#allocation5 + $0x730] sm:$0xff]  ;;  %v120_v44 = vld [vmem:[#allocation5 + $0x108] sm:$0xff] }
  0x7a   :  { %630 = vmatprep.subr.mxu1 %v394_v49  ;;  %560 = vmatpush2.msra.mxu0 %v201_v50  ;;  %v312_v45 = vld [vmem:[#allocation5 + $0x708] sm:$0xff]  ;;  %v119_v46 = vld [vmem:[#allocation5 + $0x100] sm:$0xff]  ;;  %v114_v48 = vld [vmem:[#allocation5 + $0xd8] sm:$0xff] }
  0x7b   :  { %631 = vmatpush2.msra.mxu1 %v393_v51  ;;  %561 = vmatprep.subr.mxu0 %v196_v52  ;;  %v311_v47 = vld [vmem:[#allocation5 + $0x700] sm:$0xff]  ;;  %v306_v49 = vld [vmem:[#allocation5 + $0x6d8] sm:$0xff]  ;;  %v113_v50 = vld [vmem:[#allocation5 + $0xd0] sm:$0xff] }
  0x7c   :  { %632 = vmatprep.subr.mxu1 %v388_v53  ;;  %562 = vmatpush2.msra.mxu0 %v195_v54  ;;  %v305_v51 = vld [vmem:[#allocation5 + $0x6d0] sm:$0xff]  ;;  %v108_v52 = vld [vmem:[#allocation5 + $0xa8] sm:$0xff]  ;;  %v107_v54 = vld [vmem:[#allocation5 + $0xa0] sm:$0xff] }
  0x7d   :  { %633 = vmatpush2.msra.mxu1 %v387_v55  ;;  %563 = vmatprep.subr.mxu0 %v190_v56  ;;  %v300_v53 = vld [vmem:[#allocation5 + $0x6a8] sm:$0xff]  ;;  %v299_v55 = vld [vmem:[#allocation5 + $0x6a0] sm:$0xff]  ;;  %v102_v56 = vld [vmem:[#allocation5 + $0x78] sm:$0xff] }
  0x7e   :  { %634 = vmatprep.subr.mxu1 %v382_v57  ;;  %564 = vmatpush2.msra.mxu0 %v189_v58  ;;  %v294_v57 = vld [vmem:[#allocation5 + $0x678] sm:$0xff]  ;;  %v101_v58 = vld [vmem:[#allocation5 + $0x70] sm:$0xff] }
  0x7f   :  { %635 = vmatpush2.msra.mxu1 %v381_v59  ;;  %565 = vmatprep.subr.mxu0 %v184_v60  ;;  %v293_v59 = vld [vmem:[#allocation5 + $0x670] sm:$0xff]  ;;  %v96_v60 = vld [vmem:[#allocation5 + $0x48] sm:$0xff] }
  0x80   :  { %636 = vmatprep.subr.mxu1 %v376_v61  ;;  %566 = vmatpush2.msra.mxu0 %v183_v62  ;;  %v288_v61 = vld [vmem:[#allocation5 + $0x648] sm:$0xff]  ;;  %v95_v62 = vld [vmem:[#allocation5 + $0x40] sm:$0xff] }
  0x81   :  { %567 = vmatprep.mubr.f32.mxu0 %v1569_v63  ;;  %637 = vmatpush2.msra.mxu1 %v375_v0  ;;  %v287_v0 = vld [vmem:[#allocation5 + $0x640] sm:$0xff] }
  0x82   :  { %568 = vmatmul.mubr.f32.vlgmr.msra.gmra.mxu0 %v1571_v1  ;;  %638 = vmatprep.mubr.f32.mxu1 %v1573_v2 }
  0x83   :  { %645 = vmatprep.subr.mxu0 %v180_v3  ;;  %716 = vmatprep.subr.mxu1 %v372_v4  ;;  %v90_v3 = vld [vmem:[#allocation5 + $0x18] sm:$0xff] }
  0x84   :  { %639 = vmatmul.mubr.f32.vlgmr.msra.gmra.mxu1 %v1576_v5  ;;  %646 = vmatpush1.msra.mxu0 %v179_v6  ;;  %v282_v4 = vld [vmem:[#allocation5 + $0x618] sm:$0xff]  ;;  %v89_v6 = vld [vmem:[#allocation5 + $0x10] sm:$0xff] }
  0x85   :  { %717 = vmatpush1.msra.mxu1 %v371_v7  ;;  %647 = vmatprep.subr.mxu0 %v174_v8  ;;  %v281_v7 = vld [vmem:[#allocation5 + $0x610] sm:$0xff]  ;;  %v276_v8 = vld [vmem:[#allocation5 + $0x5e8] sm:$0xff] }
  0x86   :  { %718 = vmatprep.subr.mxu1 %v366_v9  ;;  %648 = vmatpush1.msra.mxu0 %v173_v10  ;;  %v468_v9 = vld [vmem:[#allocation5 + $0xbe8] sm:$0xff]  ;;  %v275_v10 = vld [vmem:[#allocation5 + $0x5e0] sm:$0xff] }
  0x87   :  { %719 = vmatpush1.msra.mxu1 %v365_v11  ;;  %649 = vmatprep.subr.mxu0 %v168_v12  ;;  %v467_v11 = vld [vmem:[#allocation5 + $0xbe0] sm:$0xff]  ;;  %v270_v12 = vld [vmem:[#allocation5 + $0x5b8] sm:$0xff] }
  0x88   :  { %720 = vmatprep.subr.mxu1 %v360_v13  ;;  %650 = vmatpush1.msra.mxu0 %v167_v14  ;;  %v462_v13 = vld [vmem:[#allocation5 + $0xbb8] sm:$0xff]  ;;  %v269_v14 = vld [vmem:[#allocation5 + $0x5b0] sm:$0xff] }
  0x89   :  { %721 = vmatpush1.msra.mxu1 %v359_v15  ;;  %651 = vmatprep.subr.mxu0 %v162_v16  ;;  %v461_v15 = vld [vmem:[#allocation5 + $0xbb0] sm:$0xff]  ;;  %v264_v16 = vld [vmem:[#allocation5 + $0x588] sm:$0xff] }
  0x8a   :  { %722 = vmatprep.subr.mxu1 %v354_v17  ;;  %652 = vmatpush1.msra.mxu0 %v161_v18  ;;  %v456_v17 = vld [vmem:[#allocation5 + $0xb88] sm:$0xff]  ;;  %v263_v18 = vld [vmem:[#allocation5 + $0x580] sm:$0xff] }
  0x8b   :  { %723 = vmatpush1.msra.mxu1 %v353_v19  ;;  %653 = vmatprep.subr.mxu0 %v156_v20  ;;  %v455_v19 = vld [vmem:[#allocation5 + $0xb80] sm:$0xff]  ;;  %v258_v20 = vld [vmem:[#allocation5 + $0x558] sm:$0xff] }
  0x8c   :  { %724 = vmatprep.subr.mxu1 %v348_v21  ;;  %654 = vmatpush1.msra.mxu0 %v155_v22  ;;  %v450_v21 = vld [vmem:[#allocation5 + $0xb58] sm:$0xff]  ;;  %v257_v22 = vld [vmem:[#allocation5 + $0x550] sm:$0xff] }
  0x8d   :  { %725 = vmatpush1.msra.mxu1 %v347_v23  ;;  %655 = vmatprep.subr.mxu0 %v150_v24  ;;  %v449_v23 = vld [vmem:[#allocation5 + $0xb50] sm:$0xff]  ;;  %v252_v24 = vld [vmem:[#allocation5 + $0x528] sm:$0xff] }
  0x8e   :  { %726 = vmatprep.subr.mxu1 %v342_v25  ;;  %656 = vmatpush1.msra.mxu0 %v149_v26  ;;  %v444_v25 = vld [vmem:[#allocation5 + $0xb28] sm:$0xff]  ;;  %v251_v26 = vld [vmem:[#allocation5 + $0x520] sm:$0xff] }
  0x8f   :  { %727 = vmatpush1.msra.mxu1 %v341_v27  ;;  %657 = vmatprep.subr.mxu0 %v144_v28  ;;  %v443_v27 = vld [vmem:[#allocation5 + $0xb20] sm:$0xff]  ;;  %v246_v28 = vld [vmem:[#allocation5 + $0x4f8] sm:$0xff] }
  0x90   :  { %728 = vmatprep.subr.mxu1 %v336_v29  ;;  %658 = vmatpush1.msra.mxu0 %v143_v30  ;;  %v438_v29 = vld [vmem:[#allocation5 + $0xaf8] sm:$0xff]  ;;  %v245_v30 = vld [vmem:[#allocation5 + $0x4f0] sm:$0xff] }
  0x91   :  { %729 = vmatpush1.msra.mxu1 %v335_v31  ;;  %659 = vmatprep.subr.mxu0 %v138_v32  ;;  %v437_v31 = vld [vmem:[#allocation5 + $0xaf0] sm:$0xff]  ;;  %v240_v32 = vld [vmem:[#allocation5 + $0x4c8] sm:$0xff] }
  0x92   :  { %730 = vmatprep.subr.mxu1 %v330_v33  ;;  %660 = vmatpush1.msra.mxu0 %v137_v34  ;;  %v432_v33 = vld [vmem:[#allocation5 + $0xac8] sm:$0xff]  ;;  %v239_v34 = vld [vmem:[#allocation5 + $0x4c0] sm:$0xff] }
  0x93   :  { %731 = vmatpush1.msra.mxu1 %v329_v35  ;;  %661 = vmatprep.subr.mxu0 %v132_v36  ;;  %v431_v35 = vld [vmem:[#allocation5 + $0xac0] sm:$0xff]  ;;  %v234_v36 = vld [vmem:[#allocation5 + $0x498] sm:$0xff] }
  0x94   :  { %732 = vmatprep.subr.mxu1 %v324_v37  ;;  %662 = vmatpush1.msra.mxu0 %v131_v38  ;;  %v426_v37 = vld [vmem:[#allocation5 + $0xa98] sm:$0xff]  ;;  %v233_v38 = vld [vmem:[#allocation5 + $0x490] sm:$0xff] }
  0x95   :  { %733 = vmatpush1.msra.mxu1 %v323_v39  ;;  %663 = vmatprep.subr.mxu0 %v126_v40  ;;  %v425_v39 = vld [vmem:[#allocation5 + $0xa90] sm:$0xff]  ;;  %v228_v40 = vld [vmem:[#allocation5 + $0x468] sm:$0xff] }
  0x96   :  { %734 = vmatprep.subr.mxu1 %v318_v41  ;;  %664 = vmatpush1.msra.mxu0 %v125_v42  ;;  %v420_v41 = vld [vmem:[#allocation5 + $0xa68] sm:$0xff]  ;;  %v227_v42 = vld [vmem:[#allocation5 + $0x460] sm:$0xff] }
  0x97   :  { %735 = vmatpush1.msra.mxu1 %v317_v43  ;;  %665 = vmatprep.subr.mxu0 %v120_v44  ;;  %v419_v43 = vld [vmem:[#allocation5 + $0xa60] sm:$0xff]  ;;  %v222_v44 = vld [vmem:[#allocation5 + $0x438] sm:$0xff] }
  0x98   :  { %736 = vmatprep.subr.mxu1 %v312_v45  ;;  %666 = vmatpush1.msra.mxu0 %v119_v46  ;;  %v414_v45 = vld [vmem:[#allocation5 + $0xa38] sm:$0xff]  ;;  %v221_v46 = vld [vmem:[#allocation5 + $0x430] sm:$0xff] }
  0x99   :  { %737 = vmatpush1.msra.mxu1 %v311_v47  ;;  %667 = vmatprep.subr.mxu0 %v114_v48  ;;  %v413_v47 = vld [vmem:[#allocation5 + $0xa30] sm:$0xff]  ;;  %v216_v48 = vld [vmem:[#allocation5 + $0x408] sm:$0xff] }
  0x9a   :  { %738 = vmatprep.subr.mxu1 %v306_v49  ;;  %668 = vmatpush1.msra.mxu0 %v113_v50  ;;  %v408_v49 = vld [vmem:[#allocation5 + $0xa08] sm:$0xff]  ;;  %v215_v50 = vld [vmem:[#allocation5 + $0x400] sm:$0xff] }
  0x9b   :  { %739 = vmatpush1.msra.mxu1 %v305_v51  ;;  %669 = vmatprep.subr.mxu0 %v108_v52  ;;  %v407_v51 = vld [vmem:[#allocation5 + $0xa00] sm:$0xff]  ;;  %v210_v52 = vld [vmem:[#allocation5 + $0x3d8] sm:$0xff] }
  0x9c   :  { %740 = vmatprep.subr.mxu1 %v300_v53  ;;  %670 = vmatpush1.msra.mxu0 %v107_v54  ;;  %v402_v53 = vld [vmem:[#allocation5 + $0x9d8] sm:$0xff]  ;;  %v209_v54 = vld [vmem:[#allocation5 + $0x3d0] sm:$0xff] }
  0x9d   :  { %741 = vmatpush1.msra.mxu1 %v299_v55  ;;  %671 = vmatprep.subr.mxu0 %v102_v56  ;;  %v401_v55 = vld [vmem:[#allocation5 + $0x9d0] sm:$0xff]  ;;  %v204_v56 = vld [vmem:[#allocation5 + $0x3a8] sm:$0xff] }
  0x9e   :  { %742 = vmatprep.subr.mxu1 %v294_v57  ;;  %672 = vmatpush1.msra.mxu0 %v101_v58  ;;  %v396_v57 = vld [vmem:[#allocation5 + $0x9a8] sm:$0xff]  ;;  %v203_v58 = vld [vmem:[#allocation5 + $0x3a0] sm:$0xff] }
  0x9f   :  { %743 = vmatpush1.msra.mxu1 %v293_v59  ;;  %673 = vmatprep.subr.mxu0 %v96_v60  ;;  %v395_v59 = vld [vmem:[#allocation5 + $0x9a0] sm:$0xff]  ;;  %v198_v60 = vld [vmem:[#allocation5 + $0x378] sm:$0xff] }
  0xa0   :  { %744 = vmatprep.subr.mxu1 %v288_v61  ;;  %674 = vmatpush1.msra.mxu0 %v95_v62  ;;  %v390_v61 = vld [vmem:[#allocation5 + $0x978] sm:$0xff]  ;;  %v197_v62 = vld [vmem:[#allocation5 + $0x370] sm:$0xff] }
  0xa1   :  { %745 = vmatpush1.msra.mxu1 %v287_v0  ;;  %675 = vmatprep.subr.mxu0 %v90_v3  ;;  %v389_v0 = vld [vmem:[#allocation5 + $0x970] sm:$0xff]  ;;  %v192_v3 = vld [vmem:[#allocation5 + $0x348] sm:$0xff] }
  0xa2   :  { %746 = vmatprep.subr.mxu1 %v282_v4  ;;  %676 = vmatpush1.msra.mxu0 %v89_v6  ;;  %v384_v4 = vld [vmem:[#allocation5 + $0x948] sm:$0xff]  ;;  %v191_v6 = vld [vmem:[#allocation5 + $0x340] sm:$0xff] }
  0xa3   :  { %747 = vmatpush1.msra.mxu1 %v281_v7  ;;  %677 = vmatprep.subr.mxu0 %v276_v8  ;;  %v383_v7 = vld [vmem:[#allocation5 + $0x940] sm:$0xff]  ;;  %v186_v8 = vld [vmem:[#allocation5 + $0x318] sm:$0xff] }
  0xa4   :  { %748 = vmatprep.subr.mxu1 %v468_v9  ;;  %678 = vmatpush2.msra.mxu0 %v275_v10  ;;  %v378_v9 = vld [vmem:[#allocation5 + $0x918] sm:$0xff]  ;;  %v185_v10 = vld [vmem:[#allocation5 + $0x310] sm:$0xff] }
  0xa5   :  { %749 = vmatpush2.msra.mxu1 %v467_v11  ;;  %679 = vmatprep.subr.mxu0 %v270_v12  ;;  %v377_v11 = vld [vmem:[#allocation5 + $0x910] sm:$0xff]  ;;  %v182_v12 = vld [vmem:[#allocation5 + $0x2f8] sm:$0xff] }
  0xa6   :  { %750 = vmatprep.subr.mxu1 %v462_v13  ;;  %680 = vmatpush2.msra.mxu0 %v269_v14  ;;  %v374_v13 = vld [vmem:[#allocation5 + $0x8f8] sm:$0xff]  ;;  %v181_v14 = vld [vmem:[#allocation5 + $0x2f0] sm:$0xff] }
  0xa7   :  { %751 = vmatpush2.msra.mxu1 %v461_v15  ;;  %681 = vmatprep.subr.mxu0 %v264_v16  ;;  %v373_v15 = vld [vmem:[#allocation5 + $0x8f0] sm:$0xff]  ;;  %v176_v16 = vld [vmem:[#allocation5 + $0x2c8] sm:$0xff] }
  0xa8   :  { %752 = vmatprep.subr.mxu1 %v456_v17  ;;  %682 = vmatpush2.msra.mxu0 %v263_v18  ;;  %v368_v17 = vld [vmem:[#allocation5 + $0x8c8] sm:$0xff]  ;;  %v175_v18 = vld [vmem:[#allocation5 + $0x2c0] sm:$0xff] }
  0xa9   :  { %753 = vmatpush2.msra.mxu1 %v455_v19  ;;  %683 = vmatprep.subr.mxu0 %v258_v20  ;;  %v367_v19 = vld [vmem:[#allocation5 + $0x8c0] sm:$0xff]  ;;  %v170_v20 = vld [vmem:[#allocation5 + $0x298] sm:$0xff] }
  0xaa   :  { %754 = vmatprep.subr.mxu1 %v450_v21  ;;  %684 = vmatpush2.msra.mxu0 %v257_v22  ;;  %v169_v21 = vld [vmem:[#allocation5 + $0x290] sm:$0xff]  ;;  %v164_v22 = vld [vmem:[#allocation5 + $0x268] sm:$0xff] }
  0xab   :  { %755 = vmatpush2.msra.mxu1 %v449_v23  ;;  %685 = vmatprep.subr.mxu0 %v252_v24  ;;  %v163_v23 = vld [vmem:[#allocation5 + $0x260] sm:$0xff] }
  0xac   :  { %756 = vmatprep.subr.mxu1 %v444_v25  ;;  %686 = vmatpush2.msra.mxu0 %v251_v26  ;;  %v355_v24 = vld [vmem:[#allocation5 + $0x860] sm:$0xff]  ;;  %v350_v25 = vld [vmem:[#allocation5 + $0x838] sm:$0xff]  ;;  %v157_v26 = vld [vmem:[#allocation5 + $0x230] sm:$0xff] }
  0xad   :  { %757 = vmatpush2.msra.mxu1 %v443_v27  ;;  %687 = vmatprep.subr.mxu0 %v246_v28  ;;  %v349_v27 = vld [vmem:[#allocation5 + $0x830] sm:$0xff]  ;;  %v152_v28 = vld [vmem:[#allocation5 + $0x208] sm:$0xff] }
  0xae   :  { %758 = vmatprep.subr.mxu1 %v438_v29  ;;  %688 = vmatpush2.msra.mxu0 %v245_v30  ;;  %v344_v29 = vld [vmem:[#allocation5 + $0x808] sm:$0xff]  ;;  %v151_v30 = vld [vmem:[#allocation5 + $0x200] sm:$0xff] }
  0xaf   :  { %759 = vmatpush2.msra.mxu1 %v437_v31  ;;  %689 = vmatprep.subr.mxu0 %v240_v32  ;;  %v343_v31 = vld [vmem:[#allocation5 + $0x800] sm:$0xff]  ;;  %v146_v32 = vld [vmem:[#allocation5 + $0x1d8] sm:$0xff] }
  0xb0   :  { %760 = vmatprep.subr.mxu1 %v432_v33  ;;  %690 = vmatpush2.msra.mxu0 %v239_v34  ;;  %v338_v33 = vld [vmem:[#allocation5 + $0x7d8] sm:$0xff]  ;;  %v145_v34 = vld [vmem:[#allocation5 + $0x1d0] sm:$0xff] }
  0xb1   :  { %761 = vmatpush2.msra.mxu1 %v431_v35  ;;  %691 = vmatprep.subr.mxu0 %v234_v36  ;;  %v337_v35 = vld [vmem:[#allocation5 + $0x7d0] sm:$0xff]  ;;  %v140_v36 = vld [vmem:[#allocation5 + $0x1a8] sm:$0xff] }
  0xb2   :  { %762 = vmatprep.subr.mxu1 %v426_v37  ;;  %692 = vmatpush2.msra.mxu0 %v233_v38  ;;  %v332_v37 = vld [vmem:[#allocation5 + $0x7a8] sm:$0xff]  ;;  %v139_v38 = vld [vmem:[#allocation5 + $0x1a0] sm:$0xff] }
  0xb3   :  { %763 = vmatpush2.msra.mxu1 %v425_v39  ;;  %693 = vmatprep.subr.mxu0 %v228_v40  ;;  %v331_v39 = vld [vmem:[#allocation5 + $0x7a0] sm:$0xff]  ;;  %v134_v40 = vld [vmem:[#allocation5 + $0x178] sm:$0xff] }
  0xb4   :  { %764 = vmatprep.subr.mxu1 %v420_v41  ;;  %694 = vmatpush2.msra.mxu0 %v227_v42  ;;  %v326_v41 = vld [vmem:[#allocation5 + $0x778] sm:$0xff]  ;;  %v133_v42 = vld [vmem:[#allocation5 + $0x170] sm:$0xff] }
  0xb5   :  { %765 = vmatpush2.msra.mxu1 %v419_v43  ;;  %695 = vmatprep.subr.mxu0 %v222_v44  ;;  %v325_v43 = vld [vmem:[#allocation5 + $0x770] sm:$0xff]  ;;  %v128_v44 = vld [vmem:[#allocation5 + $0x148] sm:$0xff] }
  0xb6   :  { %766 = vmatprep.subr.mxu1 %v414_v45  ;;  %696 = vmatpush2.msra.mxu0 %v221_v46  ;;  %v320_v45 = vld [vmem:[#allocation5 + $0x748] sm:$0xff]  ;;  %v127_v46 = vld [vmem:[#allocation5 + $0x140] sm:$0xff] }
  0xb7   :  { %767 = vmatpush2.msra.mxu1 %v413_v47  ;;  %697 = vmatprep.subr.mxu0 %v216_v48  ;;  %v319_v47 = vld [vmem:[#allocation5 + $0x740] sm:$0xff]  ;;  %v122_v48 = vld [vmem:[#allocation5 + $0x118] sm:$0xff] }
  0xb8   :  { %768 = vmatprep.subr.mxu1 %v408_v49  ;;  %698 = vmatpush2.msra.mxu0 %v215_v50  ;;  %v314_v49 = vld [vmem:[#allocation5 + $0x718] sm:$0xff]  ;;  %v121_v50 = vld [vmem:[#allocation5 + $0x110] sm:$0xff] }
  0xb9   :  { %769 = vmatpush2.msra.mxu1 %v407_v51  ;;  %699 = vmatprep.subr.mxu0 %v210_v52  ;;  %v313_v51 = vld [vmem:[#allocation5 + $0x710] sm:$0xff]  ;;  %v116_v52 = vld [vmem:[#allocation5 + $0xe8] sm:$0xff] }
  0xba   :  { %770 = vmatprep.subr.mxu1 %v402_v53  ;;  %700 = vmatpush2.msra.mxu0 %v209_v54  ;;  %v308_v53 = vld [vmem:[#allocation5 + $0x6e8] sm:$0xff]  ;;  %v115_v54 = vld [vmem:[#allocation5 + $0xe0] sm:$0xff] }
  0xbb   :  { %771 = vmatpush2.msra.mxu1 %v401_v55  ;;  %701 = vmatprep.subr.mxu0 %v204_v56  ;;  %v307_v55 = vld [vmem:[#allocation5 + $0x6e0] sm:$0xff]  ;;  %v110_v56 = vld [vmem:[#allocation5 + $0xb8] sm:$0xff] }
  0xbc   :  { %772 = vmatprep.subr.mxu1 %v396_v57  ;;  %702 = vmatpush2.msra.mxu0 %v203_v58  ;;  %v302_v57 = vld [vmem:[#allocation5 + $0x6b8] sm:$0xff]  ;;  %v109_v58 = vld [vmem:[#allocation5 + $0xb0] sm:$0xff] }
  0xbd   :  { %773 = vmatpush2.msra.mxu1 %v395_v59  ;;  %703 = vmatprep.subr.mxu0 %v198_v60  ;;  %v301_v59 = vld [vmem:[#allocation5 + $0x6b0] sm:$0xff]  ;;  %v104_v60 = vld [vmem:[#allocation5 + $0x88] sm:$0xff] }
  0xbe   :  { %774 = vmatprep.subr.mxu1 %v390_v61  ;;  %704 = vmatpush2.msra.mxu0 %v197_v62  ;;  %v296_v61 = vld [vmem:[#allocation5 + $0x688] sm:$0xff]  ;;  %v103_v62 = vld [vmem:[#allocation5 + $0x80] sm:$0xff] }
  0xbf   :  { %775 = vmatpush2.msra.mxu1 %v389_v0  ;;  %705 = vmatprep.subr.mxu0 %v192_v3  ;;  %v295_v0 = vld [vmem:[#allocation5 + $0x680] sm:$0xff]  ;;  %v98_v3 = vld [vmem:[#allocation5 + $0x58] sm:$0xff] }
  0xc0   :  { %776 = vmatprep.subr.mxu1 %v384_v4  ;;  %706 = vmatpush2.msra.mxu0 %v191_v6  ;;  %v290_v4 = vld [vmem:[#allocation5 + $0x658] sm:$0xff]  ;;  %v97_v6 = vld [vmem:[#allocation5 + $0x50] sm:$0xff] }
  0xc1   :  { %777 = vmatpush2.msra.mxu1 %v383_v7  ;;  %707 = vmatprep.subr.mxu0 %v186_v8  ;;  %v289_v7 = vld [vmem:[#allocation5 + $0x650] sm:$0xff]  ;;  %v92_v8 = vld [vmem:[#allocation5 + $0x28] sm:$0xff] }
  0xc2   :  { %778 = vmatprep.subr.mxu1 %v378_v9  ;;  %708 = vmatpush2.msra.mxu0 %v185_v10  ;;  %v284_v9 = vld [vmem:[#allocation5 + $0x628] sm:$0xff]  ;;  %v91_v10 = vld [vmem:[#allocation5 + $0x20] sm:$0xff] }
  0xc3   :  { %709 = vmatprep.mubr.f32.mxu0 %v1569_v63  ;;  %779 = vmatpush2.msra.mxu1 %v377_v11  ;;  %v362_v63 = vld [vmem:[#allocation5 + $0x898] sm:$0xff]  ;;  %v283_v11 = vld [vmem:[#allocation5 + $0x620] sm:$0xff] }
  0xc4   :  { %710 = vmatmul.mubr.f32.vlgmr.msra.gmra.mxu0 %v1571_v1  ;;  %780 = vmatprep.mubr.f32.mxu1 %v1573_v2  ;;  %v361_v1 = vld [vmem:[#allocation5 + $0x890] sm:$0xff]  ;;  %v356_v2 = vld [vmem:[#allocation5 + $0x868] sm:$0xff] }
  0xc5   :  { %787 = vmatprep.subr.mxu0 %v182_v12  ;;  %858 = vmatprep.subr.mxu1 %v374_v13  ;;  %v278_v12 = vld [vmem:[#allocation5 + $0x5f8] sm:$0xff] }
  0xc6   :  { %781 = vmatmul.mubr.f32.vlgmr.msra.gmra.mxu1 %v1576_v5  ;;  %788 = vmatpush1.msra.mxu0 %v181_v14  ;;  %v158_v5 = vld [vmem:[#allocation5 + $0x238] sm:$0xff]  ;;  %v277_v14 = vld [vmem:[#allocation5 + $0x5f0] sm:$0xff] }
  0xc7   :  { %859 = vmatpush1.msra.mxu1 %v373_v15  ;;  %789 = vmatprep.subr.mxu0 %v176_v16  ;;  %v470_v13 = vld [vmem:[#allocation5 + $0xbf8] sm:$0xff]  ;;  %v469_v15 = vld [vmem:[#allocation5 + $0xbf0] sm:$0xff]  ;;  %v272_v16 = vld [vmem:[#allocation5 + $0x5c8] sm:$0xff] }
  0xc8   :  { %860 = vmatprep.subr.mxu1 %v368_v17  ;;  %790 = vmatpush1.msra.mxu0 %v175_v18  ;;  %v464_v17 = vld [vmem:[#allocation5 + $0xbc8] sm:$0xff]  ;;  %v271_v18 = vld [vmem:[#allocation5 + $0x5c0] sm:$0xff] }
  0xc9   :  { %861 = vmatpush1.msra.mxu1 %v367_v19  ;;  %791 = vmatprep.subr.mxu0 %v170_v20  ;;  %v463_v19 = vld [vmem:[#allocation5 + $0xbc0] sm:$0xff]  ;;  %v266_v20 = vld [vmem:[#allocation5 + $0x598] sm:$0xff] }
  0xca   :  { %862 = vmatprep.subr.mxu1 %v362_v63  ;;  %792 = vmatpush1.msra.mxu0 %v169_v21  ;;  %v458_v63 = vld [vmem:[#allocation5 + $0xb98] sm:$0xff]  ;;  %v265_v21 = vld [vmem:[#allocation5 + $0x590] sm:$0xff] }
  0xcb   :  { %863 = vmatpush1.msra.mxu1 %v361_v1  ;;  %793 = vmatprep.subr.mxu0 %v164_v22  ;;  %v457_v1 = vld [vmem:[#allocation5 + $0xb90] sm:$0xff]  ;;  %v260_v22 = vld [vmem:[#allocation5 + $0x568] sm:$0xff] }
  0xcc   :  { %864 = vmatprep.subr.mxu1 %v356_v2  ;;  %794 = vmatpush1.msra.mxu0 %v163_v23  ;;  %v452_v2 = vld [vmem:[#allocation5 + $0xb68] sm:$0xff]  ;;  %v259_v23 = vld [vmem:[#allocation5 + $0x560] sm:$0xff] }
  0xcd   :  { %865 = vmatpush1.msra.mxu1 %v355_v24  ;;  %795 = vmatprep.subr.mxu0 %v158_v5  ;;  %v451_v24 = vld [vmem:[#allocation5 + $0xb60] sm:$0xff]  ;;  %v254_v5 = vld [vmem:[#allocation5 + $0x538] sm:$0xff] }
  0xce   :  { %866 = vmatprep.subr.mxu1 %v350_v25  ;;  %796 = vmatpush1.msra.mxu0 %v157_v26  ;;  %v446_v25 = vld [vmem:[#allocation5 + $0xb38] sm:$0xff]  ;;  %v253_v26 = vld [vmem:[#allocation5 + $0x530] sm:$0xff] }
  0xcf   :  { %867 = vmatpush1.msra.mxu1 %v349_v27  ;;  %797 = vmatprep.subr.mxu0 %v152_v28  ;;  %v445_v27 = vld [vmem:[#allocation5 + $0xb30] sm:$0xff]  ;;  %v248_v28 = vld [vmem:[#allocation5 + $0x508] sm:$0xff] }
  0xd0   :  { %868 = vmatprep.subr.mxu1 %v344_v29  ;;  %798 = vmatpush1.msra.mxu0 %v151_v30  ;;  %v440_v29 = vld [vmem:[#allocation5 + $0xb08] sm:$0xff]  ;;  %v247_v30 = vld [vmem:[#allocation5 + $0x500] sm:$0xff] }
  0xd1   :  { %869 = vmatpush1.msra.mxu1 %v343_v31  ;;  %799 = vmatprep.subr.mxu0 %v146_v32  ;;  %v439_v31 = vld [vmem:[#allocation5 + $0xb00] sm:$0xff]  ;;  %v242_v32 = vld [vmem:[#allocation5 + $0x4d8] sm:$0xff] }
  0xd2   :  { %870 = vmatprep.subr.mxu1 %v338_v33  ;;  %800 = vmatpush1.msra.mxu0 %v145_v34  ;;  %v434_v33 = vld [vmem:[#allocation5 + $0xad8] sm:$0xff]  ;;  %v241_v34 = vld [vmem:[#allocation5 + $0x4d0] sm:$0xff] }
  0xd3   :  { %871 = vmatpush1.msra.mxu1 %v337_v35  ;;  %801 = vmatprep.subr.mxu0 %v140_v36  ;;  %v433_v35 = vld [vmem:[#allocation5 + $0xad0] sm:$0xff]  ;;  %v236_v36 = vld [vmem:[#allocation5 + $0x4a8] sm:$0xff] }
  0xd4   :  { %872 = vmatprep.subr.mxu1 %v332_v37  ;;  %802 = vmatpush1.msra.mxu0 %v139_v38  ;;  %v428_v37 = vld [vmem:[#allocation5 + $0xaa8] sm:$0xff]  ;;  %v235_v38 = vld [vmem:[#allocation5 + $0x4a0] sm:$0xff] }
  0xd5   :  { %873 = vmatpush1.msra.mxu1 %v331_v39  ;;  %803 = vmatprep.subr.mxu0 %v134_v40  ;;  %v427_v39 = vld [vmem:[#allocation5 + $0xaa0] sm:$0xff]  ;;  %v230_v40 = vld [vmem:[#allocation5 + $0x478] sm:$0xff] }
  0xd6   :  { %874 = vmatprep.subr.mxu1 %v326_v41  ;;  %804 = vmatpush1.msra.mxu0 %v133_v42  ;;  %v422_v41 = vld [vmem:[#allocation5 + $0xa78] sm:$0xff]  ;;  %v229_v42 = vld [vmem:[#allocation5 + $0x470] sm:$0xff] }
  0xd7   :  { %875 = vmatpush1.msra.mxu1 %v325_v43  ;;  %805 = vmatprep.subr.mxu0 %v128_v44  ;;  %v421_v43 = vld [vmem:[#allocation5 + $0xa70] sm:$0xff]  ;;  %v224_v44 = vld [vmem:[#allocation5 + $0x448] sm:$0xff] }
  0xd8   :  { %876 = vmatprep.subr.mxu1 %v320_v45  ;;  %806 = vmatpush1.msra.mxu0 %v127_v46  ;;  %v416_v45 = vld [vmem:[#allocation5 + $0xa48] sm:$0xff]  ;;  %v223_v46 = vld [vmem:[#allocation5 + $0x440] sm:$0xff] }
  0xd9   :  { %877 = vmatpush1.msra.mxu1 %v319_v47  ;;  %807 = vmatprep.subr.mxu0 %v122_v48  ;;  %v415_v47 = vld [vmem:[#allocation5 + $0xa40] sm:$0xff]  ;;  %v218_v48 = vld [vmem:[#allocation5 + $0x418] sm:$0xff] }
  0xda   :  { %878 = vmatprep.subr.mxu1 %v314_v49  ;;  %808 = vmatpush1.msra.mxu0 %v121_v50  ;;  %v410_v49 = vld [vmem:[#allocation5 + $0xa18] sm:$0xff]  ;;  %v217_v50 = vld [vmem:[#allocation5 + $0x410] sm:$0xff] }
  0xdb   :  { %879 = vmatpush1.msra.mxu1 %v313_v51  ;;  %809 = vmatprep.subr.mxu0 %v116_v52  ;;  %v409_v51 = vld [vmem:[#allocation5 + $0xa10] sm:$0xff]  ;;  %v212_v52 = vld [vmem:[#allocation5 + $0x3e8] sm:$0xff] }
  0xdc   :  { %880 = vmatprep.subr.mxu1 %v308_v53  ;;  %810 = vmatpush1.msra.mxu0 %v115_v54  ;;  %v404_v53 = vld [vmem:[#allocation5 + $0x9e8] sm:$0xff]  ;;  %v211_v54 = vld [vmem:[#allocation5 + $0x3e0] sm:$0xff] }
  0xdd   :  { %881 = vmatpush1.msra.mxu1 %v307_v55  ;;  %811 = vmatprep.subr.mxu0 %v110_v56  ;;  %v403_v55 = vld [vmem:[#allocation5 + $0x9e0] sm:$0xff]  ;;  %v206_v56 = vld [vmem:[#allocation5 + $0x3b8] sm:$0xff] }
  0xde   :  { %882 = vmatprep.subr.mxu1 %v302_v57  ;;  %812 = vmatpush1.msra.mxu0 %v109_v58  ;;  %v398_v57 = vld [vmem:[#allocation5 + $0x9b8] sm:$0xff]  ;;  %v205_v58 = vld [vmem:[#allocation5 + $0x3b0] sm:$0xff] }
  0xdf   :  { %883 = vmatpush1.msra.mxu1 %v301_v59  ;;  %813 = vmatprep.subr.mxu0 %v104_v60  ;;  %v397_v59 = vld [vmem:[#allocation5 + $0x9b0] sm:$0xff]  ;;  %v200_v60 = vld [vmem:[#allocation5 + $0x388] sm:$0xff] }
  0xe0   :  { %884 = vmatprep.subr.mxu1 %v296_v61  ;;  %814 = vmatpush1.msra.mxu0 %v103_v62  ;;  %v392_v61 = vld [vmem:[#allocation5 + $0x988] sm:$0xff]  ;;  %v199_v62 = vld [vmem:[#allocation5 + $0x380] sm:$0xff] }
  0xe1   :  { %885 = vmatpush1.msra.mxu1 %v295_v0  ;;  %815 = vmatprep.subr.mxu0 %v98_v3  ;;  %v391_v0 = vld [vmem:[#allocation5 + $0x980] sm:$0xff]  ;;  %v194_v3 = vld [vmem:[#allocation5 + $0x358] sm:$0xff] }
  0xe2   :  { %886 = vmatprep.subr.mxu1 %v290_v4  ;;  %816 = vmatpush1.msra.mxu0 %v97_v6  ;;  %v386_v4 = vld [vmem:[#allocation5 + $0x958] sm:$0xff]  ;;  %v193_v6 = vld [vmem:[#allocation5 + $0x350] sm:$0xff] }
  0xe3   :  { %887 = vmatpush1.msra.mxu1 %v289_v7  ;;  %817 = vmatprep.subr.mxu0 %v92_v8  ;;  %v385_v7 = vld [vmem:[#allocation5 + $0x950] sm:$0xff]  ;;  %v188_v8 = vld [vmem:[#allocation5 + $0x328] sm:$0xff] }
  0xe4   :  { %888 = vmatprep.subr.mxu1 %v284_v9  ;;  %818 = vmatpush1.msra.mxu0 %v91_v10  ;;  %v380_v9 = vld [vmem:[#allocation5 + $0x928] sm:$0xff]  ;;  %v187_v10 = vld [vmem:[#allocation5 + $0x320] sm:$0xff] }
  0xe5   :  { %889 = vmatpush1.msra.mxu1 %v283_v11  ;;  %819 = vmatprep.subr.mxu0 %v278_v12  ;;  %v379_v11 = vld [vmem:[#allocation5 + $0x920] sm:$0xff]  ;;  %v1382_v12 = vld [vmem:[#allocation2 + $0x8] sm:$0xff] }
  0xe6   :  { %890 = vmatprep.subr.mxu1 %v470_v13  ;;  %820 = vmatpush2.msra.mxu0 %v277_v14  ;;  %v966_v13 = vld [vmem:[#allocation8 + $0xf8] sm:$0xff] }
  0xe7   :  { %891 = vmatpush2.msra.mxu1 %v469_v15  ;;  %821 = vmatprep.subr.mxu0 %v272_v16  ;;  %v998_v14 = vld [vmem:[#allocation8 + $0x1f8] sm:$0xff] }
  0xe8   :  { %892 = vmatprep.subr.mxu1 %v464_v17  ;;  %822 = vmatpush2.msra.mxu0 %v271_v18  ;;  %v1383_v15 = vld [vmem:[#allocation2 + $0x18] sm:$0xff]  ;;  %v1384_v18 = vld [vmem:[#allocation2] sm:$0xff] }
  0xe9   :  { %893 = vmatpush2.msra.mxu1 %v463_v19  ;;  %823 = vmatprep.subr.mxu0 %v266_v20  ;;  %v950_v16 = vld [vmem:[#allocation8 + $0x78] sm:$0xff]  ;;  %v1385_v19 = vld [vmem:[#allocation2 + $0x10] sm:$0xff] }
  0xea   :  { %894 = vmatprep.subr.mxu1 %v458_v63  ;;  %824 = vmatpush2.msra.mxu0 %v265_v21  ;;  %v982_v17 = vld [vmem:[#allocation8 + $0x178] sm:$0xff]  ;;  %v965_v20 = vld [vmem:[#allocation8 + $0xf0] sm:$0xff] }
  0xeb   :  { %895 = vmatpush2.msra.mxu1 %v457_v1  ;;  %825 = vmatprep.subr.mxu0 %v260_v22  ;;  %v997_v63 = vld [vmem:[#allocation8 + $0x1f0] sm:$0xff]  ;;  %v964_v22 = vld [vmem:[#allocation8 + $0xe8] sm:$0xff] }
  0xec   :  { %896 = vmatprep.subr.mxu1 %v452_v2  ;;  %826 = vmatpush2.msra.mxu0 %v259_v23  ;;  %v949_v21 = vld [vmem:[#allocation8 + $0x70] sm:$0xff]  ;;  %v996_v2 = vld [vmem:[#allocation8 + $0x1e8] sm:$0xff] }
  0xed   :  { %897 = vmatpush2.msra.mxu1 %v451_v24  ;;  %827 = vmatprep.subr.mxu0 %v254_v5  ;;  %v981_v1 = vld [vmem:[#allocation8 + $0x170] sm:$0xff]  ;;  %v948_v23 = vld [vmem:[#allocation8 + $0x68] sm:$0xff]  ;;  %v963_v5 = vld [vmem:[#allocation8 + $0xe0] sm:$0xff] }
  0xee   :  { %898 = vmatprep.subr.mxu1 %v446_v25  ;;  %828 = vmatpush2.msra.mxu0 %v253_v26  ;;  %v980_v24 = vld [vmem:[#allocation8 + $0x168] sm:$0xff]  ;;  %v995_v25 = vld [vmem:[#allocation8 + $0x1e0] sm:$0xff] }
  0xef   :  { %899 = vmatpush2.msra.mxu1 %v445_v27  ;;  %829 = vmatprep.subr.mxu0 %v248_v28  ;;  %v947_v26 = vld [vmem:[#allocation8 + $0x60] sm:$0xff]  ;;  %v962_v28 = vld [vmem:[#allocation8 + $0xd8] sm:$0xff] }
  0xf0   :  { %900 = vmatprep.subr.mxu1 %v440_v29  ;;  %830 = vmatpush2.msra.mxu0 %v247_v30  ;;  %v979_v27 = vld [vmem:[#allocation8 + $0x160] sm:$0xff]  ;;  %v994_v29 = vld [vmem:[#allocation8 + $0x1d8] sm:$0xff] }
  0xf1   :  { %901 = vmatpush2.msra.mxu1 %v439_v31  ;;  %831 = vmatprep.subr.mxu0 %v242_v32  ;;  %v946_v30 = vld [vmem:[#allocation8 + $0x58] sm:$0xff]  ;;  %v961_v32 = vld [vmem:[#allocation8 + $0xd0] sm:$0xff] }
  0xf2   :  { %902 = vmatprep.subr.mxu1 %v434_v33  ;;  %832 = vmatpush2.msra.mxu0 %v241_v34  ;;  %v978_v31 = vld [vmem:[#allocation8 + $0x158] sm:$0xff]  ;;  %v993_v33 = vld [vmem:[#allocation8 + $0x1d0] sm:$0xff] }
  0xf3   :  { %903 = vmatpush2.msra.mxu1 %v433_v35  ;;  %833 = vmatprep.subr.mxu0 %v236_v36  ;;  %v945_v34 = vld [vmem:[#allocation8 + $0x50] sm:$0xff]  ;;  %v960_v36 = vld [vmem:[#allocation8 + $0xc8] sm:$0xff] }
  0xf4   :  { %904 = vmatprep.subr.mxu1 %v428_v37  ;;  %834 = vmatpush2.msra.mxu0 %v235_v38  ;;  %v977_v35 = vld [vmem:[#allocation8 + $0x150] sm:$0xff]  ;;  %v992_v37 = vld [vmem:[#allocation8 + $0x1c8] sm:$0xff] }
  0xf5   :  { %905 = vmatpush2.msra.mxu1 %v427_v39  ;;  %835 = vmatprep.subr.mxu0 %v230_v40  ;;  %v944_v38 = vld [vmem:[#allocation8 + $0x48] sm:$0xff]  ;;  %v959_v40 = vld [vmem:[#allocation8 + $0xc0] sm:$0xff] }
  0xf6   :  { %906 = vmatprep.subr.mxu1 %v422_v41  ;;  %836 = vmatpush2.msra.mxu0 %v229_v42  ;;  %v976_v39 = vld [vmem:[#allocation8 + $0x148] sm:$0xff]  ;;  %v991_v41 = vld [vmem:[#allocation8 + $0x1c0] sm:$0xff] }
  0xf7   :  { %907 = vmatpush2.msra.mxu1 %v421_v43  ;;  %837 = vmatprep.subr.mxu0 %v224_v44  ;;  %v943_v42 = vld [vmem:[#allocation8 + $0x40] sm:$0xff]  ;;  %v958_v44 = vld [vmem:[#allocation8 + $0xb8] sm:$0xff] }
  0xf8   :  { %908 = vmatprep.subr.mxu1 %v416_v45  ;;  %838 = vmatpush2.msra.mxu0 %v223_v46  ;;  %v975_v43 = vld [vmem:[#allocation8 + $0x140] sm:$0xff]  ;;  %v990_v45 = vld [vmem:[#allocation8 + $0x1b8] sm:$0xff] }
  0xf9   :  { %909 = vmatpush2.msra.mxu1 %v415_v47  ;;  %839 = vmatprep.subr.mxu0 %v218_v48  ;;  %v942_v46 = vld [vmem:[#allocation8 + $0x38] sm:$0xff]  ;;  %v957_v48 = vld [vmem:[#allocation8 + $0xb0] sm:$0xff] }
  0xfa   :  { %910 = vmatprep.subr.mxu1 %v410_v49  ;;  %840 = vmatpush2.msra.mxu0 %v217_v50  ;;  %v974_v47 = vld [vmem:[#allocation8 + $0x138] sm:$0xff]  ;;  %v989_v49 = vld [vmem:[#allocation8 + $0x1b0] sm:$0xff] }
  0xfb   :  { %911 = vmatpush2.msra.mxu1 %v409_v51  ;;  %841 = vmatprep.subr.mxu0 %v212_v52  ;;  %v941_v50 = vld [vmem:[#allocation8 + $0x30] sm:$0xff]  ;;  %v956_v52 = vld [vmem:[#allocation8 + $0xa8] sm:$0xff] }
  0xfc   :  { %912 = vmatprep.subr.mxu1 %v404_v53  ;;  %842 = vmatpush2.msra.mxu0 %v211_v54  ;;  %v973_v51 = vld [vmem:[#allocation8 + $0x130] sm:$0xff]  ;;  %v988_v53 = vld [vmem:[#allocation8 + $0x1a8] sm:$0xff] }
  0xfd   :  { %913 = vmatpush2.msra.mxu1 %v403_v55  ;;  %843 = vmatprep.subr.mxu0 %v206_v56  ;;  %v940_v54 = vld [vmem:[#allocation8 + $0x28] sm:$0xff]  ;;  %v955_v56 = vld [vmem:[#allocation8 + $0xa0] sm:$0xff] }
  0xfe   :  { %914 = vmatprep.subr.mxu1 %v398_v57  ;;  %844 = vmatpush2.msra.mxu0 %v205_v58  ;;  %v972_v55 = vld [vmem:[#allocation8 + $0x128] sm:$0xff]  ;;  %v987_v57 = vld [vmem:[#allocation8 + $0x1a0] sm:$0xff] }
  0xff   :  { %915 = vmatpush2.msra.mxu1 %v397_v59  ;;  %845 = vmatprep.subr.mxu0 %v200_v60  ;;  %v939_v58 = vld [vmem:[#allocation8 + $0x20] sm:$0xff]  ;;  %v954_v60 = vld [vmem:[#allocation8 + $0x98] sm:$0xff] }
 0x100   :  { %916 = vmatprep.subr.mxu1 %v392_v61  ;;  %846 = vmatpush2.msra.mxu0 %v199_v62  ;;  %v971_v59 = vld [vmem:[#allocation8 + $0x120] sm:$0xff]  ;;  %v986_v61 = vld [vmem:[#allocation8 + $0x198] sm:$0xff] }
 0x101   :  { %917 = vmatpush2.msra.mxu1 %v391_v0  ;;  %847 = vmatprep.subr.mxu0 %v194_v3  ;;  %v938_v62 = vld [vmem:[#allocation8 + $0x18] sm:$0xff]  ;;  %v953_v3 = vld [vmem:[#allocation8 + $0x90] sm:$0xff] }
 0x102   :  { %918 = vmatprep.subr.mxu1 %v386_v4  ;;  %848 = vmatpush2.msra.mxu0 %v193_v6  ;;  %v970_v0 = vld [vmem:[#allocation8 + $0x118] sm:$0xff]  ;;  %v985_v4 = vld [vmem:[#allocation8 + $0x190] sm:$0xff] }
 0x103   :  { %919 = vmatpush2.msra.mxu1 %v385_v7  ;;  %849 = vmatprep.subr.mxu0 %v188_v8  ;;  %v937_v6 = vld [vmem:[#allocation8 + $0x10] sm:$0xff]  ;;  %v952_v8 = vld [vmem:[#allocation8 + $0x88] sm:$0xff] }
 0x104   :  { %920 = vmatprep.subr.mxu1 %v380_v9  ;;  %850 = vmatpush2.msra.mxu0 %v187_v10  ;;  %v969_v7 = vld [vmem:[#allocation8 + $0x110] sm:$0xff]  ;;  %v984_v9 = vld [vmem:[#allocation8 + $0x188] sm:$0xff] }
 0x105   :  { %851 = vmatprep.mubr.f32.mxu0 %v1382_v12  ;;  %921 = vmatpush2.msra.mxu1 %v379_v11  ;;  %v936_v10 = vld [vmem:[#allocation8 + $0x8] sm:$0xff]  ;;  %v951_v12 = vld [vmem:[#allocation8 + $0x80] sm:$0xff] }
 0x106   :  { %922 = vmatprep.mubr.f32.mxu1 %v1383_v15  ;;  %852 = vmatmul.mubr.f32.vlgmr.msra.gmra.mxu0 %v1384_v18  ;;  %v968_v11 = vld [vmem:[#allocation8 + $0x108] sm:$0xff]  ;;  %v967_v15 = vld [vmem:[#allocation8 + $0x100] sm:$0xff] }
 0x107   :  { %923 = vmatmul.mubr.f32.vlgmr.msra.gmra.mxu1 %v1385_v19  ;;  %1267 = vmatprep.subr.mxu0 %v966_v13  ;;  %v983_v13 = vld [vmem:[#allocation8 + $0x180] sm:$0xff] }
 0x108   :  { %1302 = vmatprep.subr.mxu1 %v998_v14  ;;  %1268 = vmatpush3.msra.mxu0 %v950_v16  ;;  %v935_v14 = vld [vmem:[#allocation8] sm:$0xff]  ;;  %v1030_v16 = vld [vmem:[#allocation8 + $0x2f8] sm:$0xff] }
 0x109   :  { %1303 = vmatpush3.msra.mxu1 %v982_v17  ;;  %1269 = vmatprep.subr.mxu0 %v965_v20  ;;  %v473_v17 = vlaneseq  ;;  %v1588_v20 = vld [vmem:[#allocation7] sm:$0x3f] }
 0x10a   :  { %1304 = vmatprep.subr.mxu1 %v997_v63  ;;  %1270 = vmatpush3.msra.mxu0 %v949_v21 }
 0x10b   :  { %1305 = vmatpush3.msra.mxu1 %v981_v1  ;;  %1271 = vmatprep.subr.mxu0 %v964_v22  ;;  %v1585_v18 = vshrl.u32 %v473_v17, 7 }
 0x10c   :  { %1306 = vmatprep.subr.mxu1 %v996_v2  ;;  %1272 = vmatpush3.msra.mxu0 %v948_v23 }
 0x10d   :  { %1307 = vmatpush3.msra.mxu1 %v980_v24  ;;  %1273 = vmatprep.subr.mxu0 %v963_v5  ;;  %v475_v19 = vsub.s32 0, %v1585_v18  ;;  %v479_v63 = vsub.s32 1, %v1585_v18 }
 0x10e   :  { %1308 = vmatprep.subr.mxu1 %v995_v25  ;;  %1274 = vmatpush3.msra.mxu0 %v947_v26 }
 0x10f   :  { %1309 = vmatpush3.msra.mxu1 %v979_v27  ;;  %1275 = vmatprep.subr.mxu0 %v962_v28  ;;  %v476_v21 = vrot.slane %v1588_v20, %v475_v19  ;;  %v480_v1 = vrot.slane %v1588_v20, %v479_v63 }
 0x110   :  { %1310 = vmatprep.subr.mxu1 %v994_v29  ;;  %1276 = vmatpush3.msra.mxu0 %v946_v30  ;;  %v1014_v30 = vld [vmem:[#allocation8 + $0x278] sm:$0xff] }
 0x111   :  { %1311 = vmatpush3.msra.mxu1 %v978_v31  ;;  %1277 = vmatprep.subr.mxu0 %v961_v32  ;;  %v1029_v31 = vld [vmem:[#allocation8 + $0x2f0] sm:$0xff] }
 0x112   :  { %1312 = vmatprep.subr.mxu1 %v993_v33  ;;  %1278 = vmatpush3.msra.mxu0 %v945_v34  ;;  %v1013_v32 = vld [vmem:[#allocation8 + $0x270] sm:$0xff]  ;;  %v1028_v33 = vld [vmem:[#allocation8 + $0x2e8] sm:$0xff] }
 0x113   :  { %1313 = vmatpush3.msra.mxu1 %v977_v35  ;;  %1279 = vmatprep.subr.mxu0 %v960_v36  ;;  %v1012_v34 = vld [vmem:[#allocation8 + $0x268] sm:$0xff]  ;;  %v1027_v35 = vld [vmem:[#allocation8 + $0x2e0] sm:$0xff] }
 0x114   :  { %1314 = vmatprep.subr.mxu1 %v992_v37  ;;  %1280 = vmatpush3.msra.mxu0 %v944_v38  ;;  %v1011_v36 = vld [vmem:[#allocation8 + $0x260] sm:$0xff]  ;;  %v1026_v37 = vld [vmem:[#allocation8 + $0x2d8] sm:$0xff] }
 0x115   :  { %1315 = vmatpush3.msra.mxu1 %v976_v39  ;;  %1281 = vmatprep.subr.mxu0 %v959_v40  ;;  %v1010_v38 = vld [vmem:[#allocation8 + $0x258] sm:$0xff]  ;;  %v1025_v39 = vld [vmem:[#allocation8 + $0x2d0] sm:$0xff] }
 0x116   :  { %1316 = vmatprep.subr.mxu1 %v991_v41  ;;  %1282 = vmatpush3.msra.mxu0 %v943_v42  ;;  %v1009_v40 = vld [vmem:[#allocation8 + $0x250] sm:$0xff]  ;;  %v1024_v41 = vld [vmem:[#allocation8 + $0x2c8] sm:$0xff] }
 0x117   :  { %1317 = vmatpush3.msra.mxu1 %v975_v43  ;;  %1283 = vmatprep.subr.mxu0 %v958_v44  ;;  %v1008_v42 = vld [vmem:[#allocation8 + $0x248] sm:$0xff]  ;;  %v1023_v43 = vld [vmem:[#allocation8 + $0x2c0] sm:$0xff] }
 0x118   :  { %1318 = vmatprep.subr.mxu1 %v990_v45  ;;  %1284 = vmatpush3.msra.mxu0 %v942_v46  ;;  %v1007_v44 = vld [vmem:[#allocation8 + $0x240] sm:$0xff]  ;;  %v1022_v45 = vld [vmem:[#allocation8 + $0x2b8] sm:$0xff] }
 0x119   :  { %1319 = vmatpush3.msra.mxu1 %v974_v47  ;;  %1285 = vmatprep.subr.mxu0 %v957_v48  ;;  %v1006_v46 = vld [vmem:[#allocation8 + $0x238] sm:$0xff]  ;;  %v1021_v47 = vld [vmem:[#allocation8 + $0x2b0] sm:$0xff] }
 0x11a   :  { %1320 = vmatprep.subr.mxu1 %v989_v49  ;;  %1286 = vmatpush3.msra.mxu0 %v941_v50  ;;  %v1005_v48 = vld [vmem:[#allocation8 + $0x230] sm:$0xff]  ;;  %v1020_v49 = vld [vmem:[#allocation8 + $0x2a8] sm:$0xff] }
 0x11b   :  { %1321 = vmatpush3.msra.mxu1 %v973_v51  ;;  %1287 = vmatprep.subr.mxu0 %v956_v52  ;;  %v1004_v50 = vld [vmem:[#allocation8 + $0x228] sm:$0xff]  ;;  %v1019_v51 = vld [vmem:[#allocation8 + $0x2a0] sm:$0xff] }
 0x11c   :  { %1322 = vmatprep.subr.mxu1 %v988_v53  ;;  %1288 = vmatpush3.msra.mxu0 %v940_v54  ;;  %v1003_v52 = vld [vmem:[#allocation8 + $0x220] sm:$0xff]  ;;  %v1018_v53 = vld [vmem:[#allocation8 + $0x298] sm:$0xff] }
 0x11d   :  { %1323 = vmatpush3.msra.mxu1 %v972_v55  ;;  %1289 = vmatprep.subr.mxu0 %v955_v56  ;;  %v1002_v54 = vld [vmem:[#allocation8 + $0x218] sm:$0xff]  ;;  %v1017_v55 = vld [vmem:[#allocation8 + $0x290] sm:$0xff] }
 0x11e   :  { %1324 = vmatprep.subr.mxu1 %v987_v57  ;;  %1290 = vmatpush3.msra.mxu0 %v939_v58  ;;  %v1001_v56 = vld [vmem:[#allocation8 + $0x210] sm:$0xff]  ;;  %v1016_v57 = vld [vmem:[#allocation8 + $0x288] sm:$0xff] }
 0x11f   :  { %1325 = vmatpush3.msra.mxu1 %v971_v59  ;;  %1291 = vmatprep.subr.mxu0 %v954_v60  ;;  %v1000_v58 = vld [vmem:[#allocation8 + $0x208] sm:$0xff]  ;;  %v1015_v59 = vld [vmem:[#allocation8 + $0x280] sm:$0xff] }
 0x120   :  { %1326 = vmatprep.subr.mxu1 %v986_v61  ;;  %1292 = vmatpush3.msra.mxu0 %v938_v62  ;;  %v999_v60 = vld [vmem:[#allocation8 + $0x200] sm:$0xff]  ;;  %v483_v61 = vsub.s32 2, %v1585_v18  ;;  %v487_v62 = vsub.s32 3, %v1585_v18 }
 0x121   :  { %1327 = vmatpush3.msra.mxu1 %v970_v0  ;;  %1293 = vmatprep.subr.mxu0 %v953_v3 }
 0x122   :  { %1328 = vmatprep.subr.mxu1 %v985_v4  ;;  %1294 = vmatpush3.msra.mxu0 %v937_v6  ;;  %v484_v0 = vrot.slane %v1588_v20, %v483_v61  ;;  %v488_v3 = vrot.slane %v1588_v20, %v487_v62 }
 0x123   :  { %1329 = vmatpush3.msra.mxu1 %v969_v7  ;;  %1295 = vmatprep.subr.mxu0 %v952_v8 }
 0x124   :  { %1330 = vmatprep.subr.mxu1 %v984_v9  ;;  %1296 = vmatpush3.msra.mxu0 %v936_v10 }
 0x125   :  { %1331 = vmatpush3.msra.mxu1 %v968_v11  ;;  %1297 = vmatprep.subr.mxu0 %v951_v12 }
 0x126   :  { %1332 = vmatprep.subr.mxu1 %v983_v13  ;;  %1298 = vmatpush3.msra.mxu0 %v935_v14 }
 0x127   :  { %1333 = vmatpush3.msra.mxu1 %v967_v15  ;;  %1337 = vmatprep.subr.mxu0 %v1030_v16  ;;  %v491_v15 = vsub.s32 4, %v1585_v18  ;;  %v495_v16 = vsub.s32 5, %v1585_v18 }
 0x129   :  { %v492_v17 = vrot.slane %v1588_v20, %v491_v15  ;;  %v496_v19 = vrot.slane %v1588_v20, %v495_v16 }
 0x142   :  { %v569_v22 = vpop.f32.mrf.mxu0 }
 0x143   :  { %v570_v2 = vadd.f32 %v569_v22, %v476_v21 }
 0x144   :  { %v640_v23 = vpop.f32.mrf.mxu1  ;;  %v571_v24 = vpop.f32.mrf.mxu0 }
 0x145   :  { %v572_v5 = vadd.f32 %v571_v24, %v480_v1  ;;  %v641_v25 = vadd.f32 %v640_v23, %v570_v2 }
 0x146   :  { %v642_v26 = vpop.f32.mrf.mxu1 }
 0x147   :  { %v643_v27 = vadd.f32 %v642_v26, %v572_v5  ;;  %v929_v29 = vmax.f32 %v641_v25, 0.0 }
 0x149   :  { %v930_v28 = vmax.f32 %v643_v27, 0.0 }
 0x14b   :  { %1102 = vmatprep.mubr.f32.mxu0 %v930_v28 }
 0x14c   :  { %1103 = vmatmul.mubr.f32.vlgmr.msra.gmra.mxu0 %v929_v29 }
 0x14d   :  { %1338 = vmatpush3.msra.mxu0 %v1014_v30 }
 0x14e   :  { %1339 = vmatprep.subr.mxu0 %v1029_v31  ;;  %v1266_v31 = vld [vmem:[#allocation10] ss:$0 sm:$0xff] }
 0x14f   :  { %1340 = vmatpush3.msra.mxu0 %v1013_v32 }
 0x150   :  { %1341 = vmatprep.subr.mxu0 %v1028_v33 }
 0x151   :  { %1342 = vmatpush3.msra.mxu0 %v1012_v34 }
 0x152   :  { %1343 = vmatprep.subr.mxu0 %v1027_v35 }
 0x153   :  { %1344 = vmatpush3.msra.mxu0 %v1011_v36 }
 0x154   :  { %1345 = vmatprep.subr.mxu0 %v1026_v37 }
 0x155   :  { %1346 = vmatpush3.msra.mxu0 %v1010_v38 }
 0x156   :  { %1347 = vmatprep.subr.mxu0 %v1025_v39 }
 0x157   :  { %1348 = vmatpush3.msra.mxu0 %v1009_v40 }
 0x158   :  { %1349 = vmatprep.subr.mxu0 %v1024_v41 }
 0x159   :  { %1350 = vmatpush3.msra.mxu0 %v1008_v42 }
 0x15a   :  { %1351 = vmatprep.subr.mxu0 %v1023_v43 }
 0x15b   :  { %1352 = vmatpush3.msra.mxu0 %v1007_v44 }
 0x15c   :  { %1353 = vmatprep.subr.mxu0 %v1022_v45 }
 0x15d   :  { %1354 = vmatpush3.msra.mxu0 %v1006_v46 }
 0x15e   :  { %1355 = vmatprep.subr.mxu0 %v1021_v47 }
 0x15f   :  { %1356 = vmatpush3.msra.mxu0 %v1005_v48 }
 0x160   :  { %1357 = vmatprep.subr.mxu0 %v1020_v49 }
 0x161   :  { %1358 = vmatpush3.msra.mxu0 %v1004_v50 }
 0x162   :  { %1359 = vmatprep.subr.mxu0 %v1019_v51 }
 0x163   :  { %1360 = vmatpush3.msra.mxu0 %v1003_v52 }
 0x164   :  { %1361 = vmatprep.subr.mxu0 %v1018_v53 }
 0x165   :  { %1362 = vmatpush3.msra.mxu0 %v1002_v54 }
 0x166   :  { %1363 = vmatprep.subr.mxu0 %v1017_v55 }
 0x167   :  { %1364 = vmatpush3.msra.mxu0 %v1001_v56 }
 0x168   :  { %1365 = vmatprep.subr.mxu0 %v1016_v57 }
 0x169   :  { %1366 = vmatpush3.msra.mxu0 %v1000_v58 }
 0x16a   :  { %1367 = vmatprep.subr.mxu0 %v1015_v59 }
 0x16b   :  { %1368 = vmatpush3.msra.mxu0 %v999_v60 }
 0x184   :  { %v711_v4 = vpop.f32.mrf.mxu0 }
 0x185   :  { %v712_v6 = vadd.f32 %v711_v4, %v484_v0 }
 0x186   :  { %v782_v7 = vpop.f32.mrf.mxu1  ;;  %v713_v8 = vpop.f32.mrf.mxu0 }
 0x187   :  { %v714_v9 = vadd.f32 %v713_v8, %v488_v3  ;;  %v783_v10 = vadd.f32 %v782_v7, %v712_v6 }
 0x188   :  { %v784_v11 = vpop.f32.mrf.mxu1 }
 0x189   :  { %v785_v12 = vadd.f32 %v784_v11, %v714_v9  ;;  %v931_v14 = vmax.f32 %v783_v10, 0.0 }
 0x18b   :  { %v932_v13 = vmax.f32 %v785_v12, 0.0 }
 0x18d   :  { %1172 = vmatprep.mubr.f32.mxu1 %v932_v13 }
 0x18e   :  { %1173 = vmatmul.mubr.f32.vlgmr.msra.gmra.mxu1 %v931_v14 }
 0x1c6   :  { %v853_v63 = vpop.f32.mrf.mxu0 }
 0x1c7   :  { %v924_v21 = vpop.f32.mrf.mxu1  ;;  %v854_v1 = vadd.f32 %v853_v63, %v492_v17 }
 0x1c8   :  { %v855_v22 = vpop.f32.mrf.mxu0 }
 0x1c9   :  { %v856_v2 = vadd.f32 %v855_v22, %v496_v19  ;;  %v925_v23 = vadd.f32 %v924_v21, %v854_v1  ;;  %v926_v24 = vpop.f32.mrf.mxu1 }
 0x1cb   :  { %v927_v5 = vadd.f32 %v926_v24, %v856_v2  ;;  %v933_v26 = vmax.f32 %v925_v23, 0.0 }
 0x1cd   :  { %v934_v25 = vmax.f32 %v927_v5, 0.0 }
 0x1cf   :  { %1242 = vmatprep.mubr.f32.mxu0 %v934_v25 }
 0x1d0   :  { %1243 = vmatmul.mubr.f32.vlgmr.msra.gmra.mxu0 %v933_v26 }
 0x20c   :  { %v1299_v27 = vpop.f32.mrf.mxu0 }
 0x20e   :  { %v1300_v29 = vpop.f32.mrf.mxu0 }
 0x20f   :  { %v1301_v30 = vadd.f32 %v1300_v29, %v1299_v27 }
 0x211   :  { %v1105_v33 = vadd.f32 %v1301_v30, %v1266_v31 }
 0x24e   :  { %v1334_v28 = vpop.f32.mrf.mxu1 }
 0x250   :  { %v1335_v18 = vpop.f32.mrf.mxu1 }
 0x251   :  { %v1336_v32 = vadd.f32 %v1335_v18, %v1334_v28 }
 0x253   :  { %v1175_v35 = vadd.f32 %v1336_v32, %v1105_v33 }
 0x290   :  { %v1369_v20 = vpop.f32.mrf.mxu0 }
 0x292   :  { %v1370_v34 = vpop.f32.mrf.mxu0 }
 0x293   :  { %v1371_v36 = vadd.f32 %v1370_v34, %v1369_v20 }
 0x295   :  { %v1245_v37 = vadd.f32 %v1371_v36, %v1175_v35 }
 0x297   :  { %1248 = vst [vmem:[#allocation11] sm:$0xff] %v1245_v37 }
 0x298   :  { %1497 = shalt.err (!%p1494_p1)
}
 0x299   :  { %1258 = dma.vmem_to_hbm [thread:$0]  %s1256_s4, 128, %s1609_s5, [#allocation4]  }
 0x29a   :  { %1512 = dma.done.wait [#allocation4], 128  }
 0x29b   :  { %1513 = vsyncadd [#allocation4], 4294967168 }
 0x29c   :  { %1262 = vsyncpa [#allocation3], 1 }
 0x29d   :  { %1263 = vsyncpa [#allocation6], 1 }
 0x29e   :  { %1264 = vsyncpa [#allocation9], 1 }
 0x29f   :  { %1265 = vsyncpa [#allocation4], 1 }

</bundles_post_ra>
